<compile_context>
chip_gen: v7x
topology: tpu7x:2x2x1
jax: 0.10.0
libtpu: 0.0.40
codegen_flags: <defaults>
</compile_context>

<pallas_src>
import jax
import jax.numpy as jnp
from jax.experimental import pallas as pl
from jax.experimental.pallas import tpu as pltpu

BN_EPS = 1e-5
L2_EPS = 1e-12


# ----------------------------------------------------------------------------
# In-kernel helpers (traced inside the fused Pallas kernel).
# ----------------------------------------------------------------------------
def _bn(h, gamma=None, beta=None):
    """BatchNorm1d in training mode: biased batch statistics over rows (f32)."""
    mean = jnp.mean(h, axis=0, keepdims=True)
    var = jnp.mean((h - mean) ** 2, axis=0, keepdims=True)
    h = (h - mean) * jax.lax.rsqrt(var + BN_EPS)
    if gamma is not None:                      # affine=False -> skipped entirely
        h = h * gamma + beta
    return h


def _mxu(a_bf16, w_ref):
    """MXU matmul: bf16 operands, f32 accumulation."""
    return jnp.dot(a_bf16, w_ref[...], preferred_element_type=jnp.float32)


def _l2norm(t):
    """F.normalize(p=2, dim=-1): t / max(||t||, eps), via rsqrt (EUP slot)."""
    ss = jnp.sum(t * t, axis=-1, keepdims=True)
    return t * jax.lax.rsqrt(jnp.maximum(ss, L2_EPS * L2_EPS))


# ----------------------------------------------------------------------------
# Fully fused SimSiam forward:
#   synthetic linear feature extractor (atmos + surface), concat on batch axis,
#   SimSiamMLP projector: 2x [Linear(bias=False) -> BN -> ReLU],
#                         Linear(bias=False) -> BN(affine=False)      -> z
#   MLP predictor: Linear -> BN -> ReLU -> Linear                     -> p
#   symmetric cosine loss between p and detached z (scalar, SMEM output).
# ----------------------------------------------------------------------------
def _simsiam_kernel(fx_ref, fs_ref, wfx_ref, wfs_ref,
                    pw1_ref, pg1_ref, pb1_ref,
                    pw2_ref, pg2_ref, pb2_ref,
                    pw3_ref,
                    qw1_ref, qb1_ref, qg1_ref, qbe1_ref,
                    qw2_ref, qb2_ref,
                    loss_ref):
    # TODO(synk): `net` is user-supplied with a forward-hook feature grab; a
    # synthetic linear feature extractor stands in for the hooked hidden layer.
    hx = _mxu(fx_ref[...], wfx_ref)                              # (B, feat) f32
    hs = _mxu(fs_ref[...], wfs_ref)                              # (B, feat) f32
    # NetWrapper concatenates the two flattened representations on the batch
    # axis -> 2B rows; done directly in vregs (no scratch store/reload).
    h = jnp.concatenate([hx, hs], axis=0).astype(jnp.bfloat16)   # (2B, feat)

    # SimSiamMLP projector (all intermediates stay in vregs).
    h = jnp.maximum(_bn(_mxu(h, pw1_ref), pg1_ref[...], pb1_ref[...]), 0.0)
    h = jnp.maximum(_bn(_mxu(h.astype(jnp.bfloat16), pw2_ref),
                        pg2_ref[...], pb2_ref[...]), 0.0)
    z = _bn(_mxu(h.astype(jnp.bfloat16), pw3_ref))   # final BN affine=False, f32

    # MLP predictor (Linear layers with bias).
    g = _mxu(z.astype(jnp.bfloat16), qw1_ref) + qb1_ref[...]
    g = jnp.maximum(_bn(g, qg1_ref[...], qbe1_ref[...]), 0.0)
    p = _mxu(g.astype(jnp.bfloat16), qw2_ref) + qb2_ref[...]      # (2B, proj)

    # Symmetric SimSiam loss.  Identity augmentations => the two views are
    # identical, so loss_one == loss_two and the total is exactly 2x one term.
    # (z is the detached target; pure forward, so no stop_gradient needed.)
    per_row = 2.0 - 2.0 * jnp.sum(_l2norm(p) * _l2norm(z),
                                  axis=-1, keepdims=True)          # (2B, 1)
    loss_ref[0, 0] = 2.0 * jnp.mean(per_row)


# ----------------------------------------------------------------------------
# pallas_call wrapper: gridless, every operand whole-array in VMEM, scalar
# loss output in SMEM.
# ----------------------------------------------------------------------------
def fused_simsiam_forward(params, fx, fs):
    args = (fx, fs,
            params["w_feat_x"], params["w_feat_s"],
            params["proj_w1"], params["proj_g1"], params["proj_b1"],
            params["proj_w2"], params["proj_g2"], params["proj_b2"],
            params["proj_w3"],
            params["pred_w1"], params["pred_b1"],
            params["pred_g1"], params["pred_be1"],
            params["pred_w2"], params["pred_b2"])
    out = pl.pallas_call(
        _simsiam_kernel,
        out_shape=jax.ShapeDtypeStruct((1, 1), jnp.float32),
        in_specs=[pl.BlockSpec(memory_space=pltpu.MemorySpace.VMEM)
                  for _ in args],
        out_specs=pl.BlockSpec(memory_space=pltpu.MemorySpace.SMEM),
    )(*args)
    return out[0, 0]


# ----------------------------------------------------------------------------
# Parameter init (deterministic, synthetic) and forward orchestration.
# Weights in bf16 (halves weight DMA, native MXU path); BN vectors / biases f32.
# ----------------------------------------------------------------------------
def init_params(key, dim_x, dim_surf, feat_dim, proj_size, hidden_size):
    ks = jax.random.split(key, 7)
    w = lambda k, s: (0.05 * jax.random.normal(k, s, jnp.float32)).astype(jnp.bfloat16)
    ones = lambda n: jnp.ones((1, n), jnp.float32)
    zeros = lambda n: jnp.zeros((1, n), jnp.float32)
    return {
        # Synthetic feature extractor (stand-in for hooked backbone layer).
        "w_feat_x": w(ks[0], (dim_x, feat_dim)),
        "w_feat_s": w(ks[1], (dim_surf, feat_dim)),
        # SimSiamMLP projector (Linear layers bias-free; last BN affine=False).
        "proj_w1": w(ks[2], (feat_dim, hidden_size)),
        "proj_g1": ones(hidden_size), "proj_b1": zeros(hidden_size),
        "proj_w2": w(ks[3], (hidden_size, hidden_size)),
        "proj_g2": ones(hidden_size), "proj_b2": zeros(hidden_size),
        "proj_w3": w(ks[4], (hidden_size, proj_size)),
        # MLP predictor (Linear layers with bias; BN affine=True).
        "pred_w1": w(ks[5], (proj_size, hidden_size)),
        "pred_b1": zeros(hidden_size),
        "pred_g1": ones(hidden_size), "pred_be1": zeros(hidden_size),
        "pred_w2": w(ks[6], (hidden_size, proj_size)),
        "pred_b2": zeros(proj_size),
    }


def simsiam_forward(params, x, x_surf):
    B = x.shape[0]
    # TODO(synk): torchvision stochastic augmentations (jitter/flip/blur/crop)
    # have no Pallas equivalent -> applied as identity, so view-1 == view-2;
    # the fused kernel encodes/predicts once and doubles the symmetric loss.
    # Revisit (two encoder passes) once real stochastic augmentations exist.
    fx = x.reshape(B, -1).astype(jnp.bfloat16)
    fs = x_surf.reshape(B, -1).astype(jnp.bfloat16)
    return fused_simsiam_forward(params, fx, fs)


if __name__ == "__main__":
    # Small shapes consistent with SimSiam.__init__'s dummy forward:
    #   x ~ (B=2, channels=4, frames, H, W), x_surf ~ (B=2, surface_channels=7, H, W)
    # Feature / hidden / projection dims are multiples of 128 so every matmul
    # lane dim is vreg-aligned.  (Rows = 2B = 4: the feature matmuls are
    # effectively GEMVs; at realistic batch keep M a multiple of 8.)
    B, C, Fr, H, W = 2, 4, 3, 16, 16
    Csurf = 7
    feat_dim = 128
    proj_size = 128      # scaled-down projection_size (256 in the module)
    hidden_size = 256    # scaled-down projection_hidden_size (4096 in the module)

    key = jax.random.PRNGKey(0)
    kx, ks, kp = jax.random.split(key, 3)
    x = jax.random.normal(kx, (B, C, Fr, H, W), jnp.float32)
    x_surf = jax.random.normal(ks, (B, Csurf, H, W), jnp.float32)

    params = init_params(kp, dim_x=C * Fr * H * W, dim_surf=Csurf * H * W,
                         feat_dim=feat_dim, proj_size=proj_size,
                         hidden_size=hidden_size)

    loss = jax.jit(simsiam_forward)(params, x, x_surf)
    jax.block_until_ready(loss)
    assert loss.shape == () and bool(jnp.isfinite(loss))
    print("KERNEL_OK")
</pallas_src>

<mosaic_0001>
module attributes {stable_mosaic.version = 11 : i64} {
  func.func @_simsiam_kernel(%arg0: memref<2x3072xbf16, #tpu.memory_space<vmem>>, %arg1: memref<2x1792xbf16, #tpu.memory_space<vmem>>, %arg2: memref<3072x128xbf16, #tpu.memory_space<vmem>>, %arg3: memref<1792x128xbf16, #tpu.memory_space<vmem>>, %arg4: memref<128x256xbf16, #tpu.memory_space<vmem>>, %arg5: memref<1x256xf32, #tpu.memory_space<vmem>>, %arg6: memref<1x256xf32, #tpu.memory_space<vmem>>, %arg7: memref<256x256xbf16, #tpu.memory_space<vmem>>, %arg8: memref<1x256xf32, #tpu.memory_space<vmem>>, %arg9: memref<1x256xf32, #tpu.memory_space<vmem>>, %arg10: memref<256x128xbf16, #tpu.memory_space<vmem>>, %arg11: memref<128x256xbf16, #tpu.memory_space<vmem>>, %arg12: memref<1x256xf32, #tpu.memory_space<vmem>>, %arg13: memref<1x256xf32, #tpu.memory_space<vmem>>, %arg14: memref<1x256xf32, #tpu.memory_space<vmem>>, %arg15: memref<256x128xbf16, #tpu.memory_space<vmem>>, %arg16: memref<1x128xf32, #tpu.memory_space<vmem>>, %arg17: memref<1x1xf32, #tpu.memory_space<smem>>) attributes {dimension_semantics = [], scalar_prefetch = 0 : i64, scratch_operands = 0 : i64, tpu.core_type = #tpu.core_type<tc>} {
    %c0 = arith.constant 0 : index
    %c0_0 = arith.constant 0 : index
    %0 = vector.load %arg0[%c0, %c0_0] : memref<2x3072xbf16, #tpu.memory_space<vmem>>, vector<2x3072xbf16>
    %c0_1 = arith.constant 0 : index
    %c0_2 = arith.constant 0 : index
    %1 = vector.load %arg2[%c0_1, %c0_2] : memref<3072x128xbf16, #tpu.memory_space<vmem>>, vector<3072x128xbf16>
    %cst = arith.constant dense<0.000000e+00> : vector<2x128xf32>
    %2 = tpu.matmul %0, %1, %cst {dimension_numbers = #tpu.dot_dimension_numbers<[1], [0], [0], [1], [0, 0, 1, 1], [], []>} : vector<2x3072xbf16>, vector<3072x128xbf16>, vector<2x128xf32> -> vector<2x128xf32>
    %c0_3 = arith.constant 0 : index
    %c0_4 = arith.constant 0 : index
    %3 = vector.load %arg1[%c0_3, %c0_4] : memref<2x1792xbf16, #tpu.memory_space<vmem>>, vector<2x1792xbf16>
    %c0_5 = arith.constant 0 : index
    %c0_6 = arith.constant 0 : index
    %4 = vector.load %arg3[%c0_5, %c0_6] : memref<1792x128xbf16, #tpu.memory_space<vmem>>, vector<1792x128xbf16>
    %cst_7 = arith.constant dense<0.000000e+00> : vector<2x128xf32>
    %5 = tpu.matmul %3, %4, %cst_7 {dimension_numbers = #tpu.dot_dimension_numbers<[1], [0], [0], [1], [0, 0, 1, 1], [], []>} : vector<2x1792xbf16>, vector<1792x128xbf16>, vector<2x128xf32> -> vector<2x128xf32>
    %6 = tpu.concatenate %2, %5 in 0 : vector<2x128xf32>, vector<2x128xf32> -> vector<4x128xf32>
    %7 = arith.truncf %6 : vector<4x128xf32> to vector<4x128xbf16>
    %c0_8 = arith.constant 0 : index
    %c0_9 = arith.constant 0 : index
    %8 = vector.load %arg4[%c0_8, %c0_9] : memref<128x256xbf16, #tpu.memory_space<vmem>>, vector<128x256xbf16>
    %cst_10 = arith.constant dense<0.000000e+00> : vector<4x256xf32>
    %9 = tpu.matmul %7, %8, %cst_10 {dimension_numbers = #tpu.dot_dimension_numbers<[1], [0], [0], [1], [0, 0, 1, 1], [], []>} : vector<4x128xbf16>, vector<128x256xbf16>, vector<4x256xf32> -> vector<4x256xf32>
    %c0_11 = arith.constant 0 : index
    %c0_12 = arith.constant 0 : index
    %10 = vector.load %arg5[%c0_11, %c0_12] : memref<1x256xf32, #tpu.memory_space<vmem>>, vector<1x256xf32>
    %c0_13 = arith.constant 0 : index
    %c0_14 = arith.constant 0 : index
    %11 = vector.load %arg6[%c0_13, %c0_14] : memref<1x256xf32, #tpu.memory_space<vmem>>, vector<1x256xf32>
    %cst_15 = arith.constant dense<0.000000e+00> : vector<256xf32>
    %12 = vector.multi_reduction <add>, %9, %cst_15 [0] : vector<4x256xf32> to vector<256xf32>
    %13 = vector.shape_cast %12 : vector<256xf32> to vector<1x256xf32>
    %cst_16 = arith.constant 4.000000e+00 : f32
    %14 = vector.broadcast %cst_16 : f32 to vector<1x256xf32>
    %15 = arith.divf %13, %14 : vector<1x256xf32>
    %16 = vector.broadcast %15 : vector<1x256xf32> to vector<4x256xf32>
    %17 = arith.subf %9, %16 : vector<4x256xf32>
    %18 = arith.mulf %17, %17 : vector<4x256xf32>
    %cst_17 = arith.constant dense<0.000000e+00> : vector<256xf32>
    %19 = vector.multi_reduction <add>, %18, %cst_17 [0] : vector<4x256xf32> to vector<256xf32>
    %20 = vector.shape_cast %19 : vector<256xf32> to vector<1x256xf32>
    %cst_18 = arith.constant 4.000000e+00 : f32
    %21 = vector.broadcast %cst_18 : f32 to vector<1x256xf32>
    %22 = arith.divf %20, %21 : vector<1x256xf32>
    %23 = vector.broadcast %15 : vector<1x256xf32> to vector<4x256xf32>
    %24 = arith.subf %9, %23 : vector<4x256xf32>
    %cst_19 = arith.constant 9.99999974E-6 : f32
    %25 = vector.broadcast %cst_19 : f32 to vector<1x256xf32>
    %26 = arith.addf %22, %25 : vector<1x256xf32>
    %27 = math.rsqrt %26 : vector<1x256xf32>
    %28 = vector.broadcast %27 : vector<1x256xf32> to vector<4x256xf32>
    %29 = arith.mulf %24, %28 : vector<4x256xf32>
    %30 = vector.broadcast %10 : vector<1x256xf32> to vector<4x256xf32>
    %31 = arith.mulf %29, %30 : vector<4x256xf32>
    %32 = vector.broadcast %11 : vector<1x256xf32> to vector<4x256xf32>
    %33 = arith.addf %31, %32 : vector<4x256xf32>
    %cst_20 = arith.constant 0.000000e+00 : f32
    %34 = vector.broadcast %cst_20 : f32 to vector<4x256xf32>
    %35 = arith.maximumf %33, %34 : vector<4x256xf32>
    %36 = arith.truncf %35 : vector<4x256xf32> to vector<4x256xbf16>
    %c0_21 = arith.constant 0 : index
    %c0_22 = arith.constant 0 : index
    %37 = vector.load %arg7[%c0_21, %c0_22] : memref<256x256xbf16, #tpu.memory_space<vmem>>, vector<256x256xbf16>
    %cst_23 = arith.constant dense<0.000000e+00> : vector<4x256xf32>
    %38 = tpu.matmul %36, %37, %cst_23 {dimension_numbers = #tpu.dot_dimension_numbers<[1], [0], [0], [1], [0, 0, 1, 1], [], []>} : vector<4x256xbf16>, vector<256x256xbf16>, vector<4x256xf32> -> vector<4x256xf32>
    %c0_24 = arith.constant 0 : index
    %c0_25 = arith.constant 0 : index
    %39 = vector.load %arg8[%c0_24, %c0_25] : memref<1x256xf32, #tpu.memory_space<vmem>>, vector<1x256xf32>
    %c0_26 = arith.constant 0 : index
    %c0_27 = arith.constant 0 : index
    %40 = vector.load %arg9[%c0_26, %c0_27] : memref<1x256xf32, #tpu.memory_space<vmem>>, vector<1x256xf32>
    %cst_28 = arith.constant dense<0.000000e+00> : vector<256xf32>
    %41 = vector.multi_reduction <add>, %38, %cst_28 [0] : vector<4x256xf32> to vector<256xf32>
    %42 = vector.shape_cast %41 : vector<256xf32> to vector<1x256xf32>
    %cst_29 = arith.constant 4.000000e+00 : f32
    %43 = vector.broadcast %cst_29 : f32 to vector<1x256xf32>
    %44 = arith.divf %42, %43 : vector<1x256xf32>
    %45 = vector.broadcast %44 : vector<1x256xf32> to vector<4x256xf32>
    %46 = arith.subf %38, %45 : vector<4x256xf32>
    %47 = arith.mulf %46, %46 : vector<4x256xf32>
    %cst_30 = arith.constant dense<0.000000e+00> : vector<256xf32>
    %48 = vector.multi_reduction <add>, %47, %cst_30 [0] : vector<4x256xf32> to vector<256xf32>
    %49 = vector.shape_cast %48 : vector<256xf32> to vector<1x256xf32>
    %cst_31 = arith.constant 4.000000e+00 : f32
    %50 = vector.broadcast %cst_31 : f32 to vector<1x256xf32>
    %51 = arith.divf %49, %50 : vector<1x256xf32>
    %52 = vector.broadcast %44 : vector<1x256xf32> to vector<4x256xf32>
    %53 = arith.subf %38, %52 : vector<4x256xf32>
    %cst_32 = arith.constant 9.99999974E-6 : f32
    %54 = vector.broadcast %cst_32 : f32 to vector<1x256xf32>
    %55 = arith.addf %51, %54 : vector<1x256xf32>
    %56 = math.rsqrt %55 : vector<1x256xf32>
    %57 = vector.broadcast %56 : vector<1x256xf32> to vector<4x256xf32>
    %58 = arith.mulf %53, %57 : vector<4x256xf32>
    %59 = vector.broadcast %39 : vector<1x256xf32> to vector<4x256xf32>
    %60 = arith.mulf %58, %59 : vector<4x256xf32>
    %61 = vector.broadcast %40 : vector<1x256xf32> to vector<4x256xf32>
    %62 = arith.addf %60, %61 : vector<4x256xf32>
    %cst_33 = arith.constant 0.000000e+00 : f32
    %63 = vector.broadcast %cst_33 : f32 to vector<4x256xf32>
    %64 = arith.maximumf %62, %63 : vector<4x256xf32>
    %65 = arith.truncf %64 : vector<4x256xf32> to vector<4x256xbf16>
    %c0_34 = arith.constant 0 : index
    %c0_35 = arith.constant 0 : index
    %66 = vector.load %arg10[%c0_34, %c0_35] : memref<256x128xbf16, #tpu.memory_space<vmem>>, vector<256x128xbf16>
    %cst_36 = arith.constant dense<0.000000e+00> : vector<4x128xf32>
    %67 = tpu.matmul %65, %66, %cst_36 {dimension_numbers = #tpu.dot_dimension_numbers<[1], [0], [0], [1], [0, 0, 1, 1], [], []>} : vector<4x256xbf16>, vector<256x128xbf16>, vector<4x128xf32> -> vector<4x128xf32>
    %cst_37 = arith.constant dense<0.000000e+00> : vector<128xf32>
    %68 = vector.multi_reduction <add>, %67, %cst_37 [0] : vector<4x128xf32> to vector<128xf32>
    %69 = vector.shape_cast %68 : vector<128xf32> to vector<1x128xf32>
    %cst_38 = arith.constant 4.000000e+00 : f32
    %70 = vector.broadcast %cst_38 : f32 to vector<1x128xf32>
    %71 = arith.divf %69, %70 : vector<1x128xf32>
    %72 = vector.broadcast %71 : vector<1x128xf32> to vector<4x128xf32>
    %73 = arith.subf %67, %72 : vector<4x128xf32>
    %74 = arith.mulf %73, %73 : vector<4x128xf32>
    %cst_39 = arith.constant dense<0.000000e+00> : vector<128xf32>
    %75 = vector.multi_reduction <add>, %74, %cst_39 [0] : vector<4x128xf32> to vector<128xf32>
    %76 = vector.shape_cast %75 : vector<128xf32> to vector<1x128xf32>
    %cst_40 = arith.constant 4.000000e+00 : f32
    %77 = vector.broadcast %cst_40 : f32 to vector<1x128xf32>
    %78 = arith.divf %76, %77 : vector<1x128xf32>
    %79 = vector.broadcast %71 : vector<1x128xf32> to vector<4x128xf32>
    %80 = arith.subf %67, %79 : vector<4x128xf32>
    %cst_41 = arith.constant 9.99999974E-6 : f32
    %81 = vector.broadcast %cst_41 : f32 to vector<1x128xf32>
    %82 = arith.addf %78, %81 : vector<1x128xf32>
    %83 = math.rsqrt %82 : vector<1x128xf32>
    %84 = vector.broadcast %83 : vector<1x128xf32> to vector<4x128xf32>
    %85 = arith.mulf %80, %84 : vector<4x128xf32>
    %86 = arith.truncf %85 : vector<4x128xf32> to vector<4x128xbf16>
    %c0_42 = arith.constant 0 : index
    %c0_43 = arith.constant 0 : index
    %87 = vector.load %arg11[%c0_42, %c0_43] : memref<128x256xbf16, #tpu.memory_space<vmem>>, vector<128x256xbf16>
    %cst_44 = arith.constant dense<0.000000e+00> : vector<4x256xf32>
    %88 = tpu.matmul %86, %87, %cst_44 {dimension_numbers = #tpu.dot_dimension_numbers<[1], [0], [0], [1], [0, 0, 1, 1], [], []>} : vector<4x128xbf16>, vector<128x256xbf16>, vector<4x256xf32> -> vector<4x256xf32>
    %c0_45 = arith.constant 0 : index
    %c0_46 = arith.constant 0 : index
    %89 = vector.load %arg12[%c0_45, %c0_46] : memref<1x256xf32, #tpu.memory_space<vmem>>, vector<1x256xf32>
    %90 = vector.broadcast %89 : vector<1x256xf32> to vector<4x256xf32>
    %91 = arith.addf %88, %90 : vector<4x256xf32>
    %c0_47 = arith.constant 0 : index
    %c0_48 = arith.constant 0 : index
    %92 = vector.load %arg13[%c0_47, %c0_48] : memref<1x256xf32, #tpu.memory_space<vmem>>, vector<1x256xf32>
    %c0_49 = arith.constant 0 : index
    %c0_50 = arith.constant 0 : index
    %93 = vector.load %arg14[%c0_49, %c0_50] : memref<1x256xf32, #tpu.memory_space<vmem>>, vector<1x256xf32>
    %cst_51 = arith.constant dense<0.000000e+00> : vector<256xf32>
    %94 = vector.multi_reduction <add>, %91, %cst_51 [0] : vector<4x256xf32> to vector<256xf32>
    %95 = vector.shape_cast %94 : vector<256xf32> to vector<1x256xf32>
    %cst_52 = arith.constant 4.000000e+00 : f32
    %96 = vector.broadcast %cst_52 : f32 to vector<1x256xf32>
    %97 = arith.divf %95, %96 : vector<1x256xf32>
    %98 = vector.broadcast %97 : vector<1x256xf32> to vector<4x256xf32>
    %99 = arith.subf %91, %98 : vector<4x256xf32>
    %100 = arith.mulf %99, %99 : vector<4x256xf32>
    %cst_53 = arith.constant dense<0.000000e+00> : vector<256xf32>
    %101 = vector.multi_reduction <add>, %100, %cst_53 [0] : vector<4x256xf32> to vector<256xf32>
    %102 = vector.shape_cast %101 : vector<256xf32> to vector<1x256xf32>
    %cst_54 = arith.constant 4.000000e+00 : f32
    %103 = vector.broadcast %cst_54 : f32 to vector<1x256xf32>
    %104 = arith.divf %102, %103 : vector<1x256xf32>
    %105 = vector.broadcast %97 : vector<1x256xf32> to vector<4x256xf32>
    %106 = arith.subf %91, %105 : vector<4x256xf32>
    %cst_55 = arith.constant 9.99999974E-6 : f32
    %107 = vector.broadcast %cst_55 : f32 to vector<1x256xf32>
    %108 = arith.addf %104, %107 : vector<1x256xf32>
    %109 = math.rsqrt %108 : vector<1x256xf32>
    %110 = vector.broadcast %109 : vector<1x256xf32> to vector<4x256xf32>
    %111 = arith.mulf %106, %110 : vector<4x256xf32>
    %112 = vector.broadcast %92 : vector<1x256xf32> to vector<4x256xf32>
    %113 = arith.mulf %111, %112 : vector<4x256xf32>
    %114 = vector.broadcast %93 : vector<1x256xf32> to vector<4x256xf32>
    %115 = arith.addf %113, %114 : vector<4x256xf32>
    %cst_56 = arith.constant 0.000000e+00 : f32
    %116 = vector.broadcast %cst_56 : f32 to vector<4x256xf32>
    %117 = arith.maximumf %115, %116 : vector<4x256xf32>
    %118 = arith.truncf %117 : vector<4x256xf32> to vector<4x256xbf16>
    %c0_57 = arith.constant 0 : index
    %c0_58 = arith.constant 0 : index
    %119 = vector.load %arg15[%c0_57, %c0_58] : memref<256x128xbf16, #tpu.memory_space<vmem>>, vector<256x128xbf16>
    %cst_59 = arith.constant dense<0.000000e+00> : vector<4x128xf32>
    %120 = tpu.matmul %118, %119, %cst_59 {dimension_numbers = #tpu.dot_dimension_numbers<[1], [0], [0], [1], [0, 0, 1, 1], [], []>} : vector<4x256xbf16>, vector<256x128xbf16>, vector<4x128xf32> -> vector<4x128xf32>
    %c0_60 = arith.constant 0 : index
    %c0_61 = arith.constant 0 : index
    %121 = vector.load %arg16[%c0_60, %c0_61] : memref<1x128xf32, #tpu.memory_space<vmem>>, vector<1x128xf32>
    %122 = vector.broadcast %121 : vector<1x128xf32> to vector<4x128xf32>
    %123 = arith.addf %120, %122 : vector<4x128xf32>
    %124 = arith.mulf %123, %123 : vector<4x128xf32>
    %cst_62 = arith.constant dense<0.000000e+00> : vector<4xf32>
    %125 = vector.multi_reduction <add>, %124, %cst_62 [1] : vector<4x128xf32> to vector<4xf32>
    %126 = vector.shape_cast %125 : vector<4xf32> to vector<4x1xf32>
    %cst_63 = arith.constant 1.000000e-24 : f32
    %127 = vector.broadcast %cst_63 : f32 to vector<4x1xf32>
    %128 = arith.maximumf %126, %127 : vector<4x1xf32>
    %129 = math.rsqrt %128 : vector<4x1xf32>
    %130 = vector.broadcast %129 : vector<4x1xf32> to vector<4x128xf32>
    %131 = arith.mulf %123, %130 : vector<4x128xf32>
    %132 = arith.mulf %85, %85 : vector<4x128xf32>
    %cst_64 = arith.constant dense<0.000000e+00> : vector<4xf32>
    %133 = vector.multi_reduction <add>, %132, %cst_64 [1] : vector<4x128xf32> to vector<4xf32>
    %134 = vector.shape_cast %133 : vector<4xf32> to vector<4x1xf32>
    %cst_65 = arith.constant 1.000000e-24 : f32
    %135 = vector.broadcast %cst_65 : f32 to vector<4x1xf32>
    %136 = arith.maximumf %134, %135 : vector<4x1xf32>
    %137 = math.rsqrt %136 : vector<4x1xf32>
    %138 = vector.broadcast %137 : vector<4x1xf32> to vector<4x128xf32>
    %139 = arith.mulf %85, %138 : vector<4x128xf32>
    %140 = arith.mulf %131, %139 : vector<4x128xf32>
    %cst_66 = arith.constant dense<0.000000e+00> : vector<4xf32>
    %141 = vector.multi_reduction <add>, %140, %cst_66 [1] : vector<4x128xf32> to vector<4xf32>
    %142 = vector.shape_cast %141 : vector<4xf32> to vector<4x1xf32>
    %cst_67 = arith.constant 2.000000e+00 : f32
    %143 = vector.broadcast %cst_67 : f32 to vector<4x1xf32>
    %144 = arith.mulf %143, %142 : vector<4x1xf32>
    %cst_68 = arith.constant 2.000000e+00 : f32
    %145 = vector.broadcast %cst_68 : f32 to vector<4x1xf32>
    %146 = arith.subf %145, %144 : vector<4x1xf32>
    %147 = vector.shape_cast %146 : vector<4x1xf32> to vector<1x4x1xf32>
    %cst_69 = arith.constant dense<0.000000e+00> : vector<1xf32>
    %148 = vector.multi_reduction <add>, %147, %cst_69 [1, 2] : vector<1x4x1xf32> to vector<1xf32>
    %149 = vector.shape_cast %148 : vector<1xf32> to vector<1x1x1xf32>
    %150 = vector.extract %149[0, 0, 0] : f32 from vector<1x1x1xf32>
    %cst_70 = arith.constant 4.000000e+00 : f32
    %151 = arith.divf %150, %cst_70 : f32
    %cst_71 = arith.constant 2.000000e+00 : f32
    %152 = arith.mulf %cst_71, %151 : f32
    %c0_72 = arith.constant 0 : index
    %c0_73 = arith.constant 0 : index
    %153 = memref.load %arg17[%c0_72, %c0_73] : memref<1x1xf32, #tpu.memory_space<smem>>
    memref.store %152, %arg17[%c0_72, %c0_73] : memref<1x1xf32, #tpu.memory_space<smem>>
    return
  }
}

</mosaic_0001>

<bundles_post_ra>
// kernel: simsiam_forward.1
= control target key start
LH: loop header
LB: loop body
LE: loop exit
PB: predicated region body
PF: predicated region fallthrough
CT: control target
= control target key end

     0   :  { %s7136_s0 = inlined_call_operand.vmem [shape: bf16[2,3072], index: 0, kind: input, shape index: {}]   ;;  %s7137_s1 = inlined_call_operand.vmem [shape: bf16[2,1792], index: 1, kind: input, shape index: {}]   ;;  %s7138_s2 = inlined_call_operand.hbm [shape: bf16[3072,128], index: 2, kind: input, shape index: {}]   ;;  %s7139_s3 = inlined_call_operand.vmem [shape: bf16[1792,128], index: 3, kind: input, shape index: {}]   ;;  %s7140_s4 = inlined_call_operand.hbm [shape: bf16[128,256], index: 4, kind: input, shape index: {}]   ;;  %s7141_s5 = inlined_call_operand.vmem [shape: f32[1,256], index: 5, kind: input, shape index: {}]   ;;  %s7142_s6 = inlined_call_operand.vmem [shape: f32[1,256], index: 6, kind: input, shape index: {}]   ;;  %s7143_s7 = inlined_call_operand.vmem [shape: bf16[256,256], index: 7, kind: input, shape index: {}]   ;;  %s7144_s8 = inlined_call_operand.hbm [shape: f32[1,256], index: 8, kind: input, shape index: {}]   ;;  %s7145_s9 = inlined_call_operand.hbm [shape: f32[1,256], index: 9, kind: input, shape index: {}]   ;;  %s7146_s10 = inlined_call_operand.hbm [shape: bf16[256,128], index: 10, kind: input, shape index: {}]   ;;  %s7147_s11 = inlined_call_operand.vmem [shape: bf16[128,256], index: 11, kind: input, shape index: {}]   ;;  %s7148_s12 = inlined_call_operand.vmem [shape: f32[1,256], index: 12, kind: input, shape index: {}]   ;;  %s7149_s13 = inlined_call_operand.hbm [shape: f32[1,256], index: 13, kind: input, shape index: {}]   ;;  %s7150_s14 = inlined_call_operand.vmem [shape: f32[1,256], index: 14, kind: input, shape index: {}]   ;;  %s7151_s15 = inlined_call_operand.hbm [shape: bf16[256,128], index: 15, kind: input, shape index: {}]   ;;  %s7152_s16 = inlined_call_operand.vmem [shape: f32[1,128], index: 16, kind: input, shape index: {}]   ;;  %s7153_s17 = inlined_call_operand.hbm [shape: f32[1,1], index: 17, kind: output, shape index: {}]  }
   0x1   :  { %7157 = sst [smem:[#allocation20_spill]] %s7136_s0 }
   0x2   :  { %7158 = sst [smem:[#allocation21_spill]] %s7137_s1 }
   0x3   :  { %7159 = sst [smem:[#allocation22_spill]] %s7153_s17 }
   0x4   :  { %22 = vsyncpa [#allocation3], 0 }
   0x5   :  { %23 = vsyncpa [#allocation6], 0 }
   0x6   :  { %24 = vsyncpa [#allocation9], 0 }
   0x7   :  { %25 = vsyncpa [#allocation12], 0 }
   0x8   :  { %26 = vsyncpa [#allocation4], 0  ;;  %s6306_s24 = smov [#allocation5]   ;;  %s6132_s28 = scalar_lea.hbm %s7140_s4, 2048 }
   0x9   :  { %s50_s25 = sshll.u32 %s6306_s24, 4  ;;  %p6133_p0 = scmp.ne.s32.totalorder %s7140_s4, %s6132_s28  ;;  %s51_s25 = int_to_ptr.vmem [resolvable:$true] %s50_s25 }
   0xa   :  { %p6136_p1 = scmp.lt.u32.totalorder %s6132_s28, %s7140_s4 }
   0xc   :  { %p6138_p2 = pnand %p6136_p1, %p6133_p0 }
   0xe   :  { %6141 = shalt.err (!%p6138_p2)
}
   0xf   :  { %s6142_s19 = scalar_lea.vmem %s51_s25, 2048  ;;  %p6147_p4 = scmp.lt.s32.totalorder %s51_s25, %s51_s25 }
  0x10   :  { %p6143_p3 = scmp.ne.s32.totalorder %s51_s25, %s6142_s19  ;;  %p6148_p5 = scmp.lt.s32.totalorder %s6142_s19, %s6142_s19 }
  0x12   :  { %p6149_p6 = por %p6148_p5, %p6147_p4 }
  0x14   :  { %p6150_p7 = pnand %p6149_p6, %p6143_p3 }
  0x16   :  { %6153 = shalt.err (!%p6150_p7)
}
  0x17   :  { %s6307_s1 = smov 128   ;;  %s6308_s20 = smov 8  }
  0x18   :  { %56 = dma.hbm_to_vmem [thread:$0]  %s7140_s4, 2048, %s51_s25, [#allocation6], %s6307_s1, %s6307_s1, %s6308_s20  }
  0x19   :  { %s6309_s23 = smov [#allocation8]   ;;  %s6310_s26 = smov [#allocation11]  }
  0x1a   :  { %s79_s24 = sshll.u32 %s6309_s23, 4  ;;  %s105_s27 = sshll.u32 %s6310_s26, 4  ;;  %s80_s24 = int_to_ptr.vmem [resolvable:$true] %s79_s24  ;;  %s106_s27 = int_to_ptr.vmem [resolvable:$true] %s105_s27 }
  0x1b   :  { %s6154_s0 = scalar_lea.hbm %s7145_s9, 32 }
  0x1c   :  { %p6155_p8 = scmp.ne.s32.totalorder %s7145_s9, %s6154_s0  ;;  %p6158_p9 = scmp.lt.u32.totalorder %s6154_s0, %s7145_s9 }
  0x1e   :  { %p6160_p10 = pnand %p6158_p9, %p6155_p8 }
  0x20   :  { %6163 = shalt.err (!%p6160_p10)
}
  0x21   :  { %s6164_s4 = scalar_lea.vmem %s80_s24, 32  ;;  %p6169_p12 = scmp.lt.s32.totalorder %s80_s24, %s80_s24 }
  0x22   :  { %p6165_p11 = scmp.ne.s32.totalorder %s80_s24, %s6164_s4  ;;  %p6170_p13 = scmp.lt.s32.totalorder %s6164_s4, %s6164_s4 }
  0x24   :  { %p6171_p0 = por %p6170_p13, %p6169_p12 }
  0x26   :  { %p6172_p1 = pnand %p6171_p0, %p6165_p11 }
  0x28   :  { %6175 = shalt.err (!%p6172_p1)
}
  0x29   :  { %82 = dma.hbm_to_vmem [thread:$0]  %s7145_s9, 32, %s80_s24, [#allocation9]  }
  0x2a   :  { %s6176_s22 = scalar_lea.hbm %s7149_s13, 32 }
  0x2b   :  { %p6177_p2 = scmp.ne.s32.totalorder %s7149_s13, %s6176_s22  ;;  %p6180_p3 = scmp.lt.u32.totalorder %s6176_s22, %s7149_s13 }
  0x2d   :  { %p6182_p4 = pnand %p6180_p3, %p6177_p2 }
  0x2f   :  { %6185 = shalt.err (!%p6182_p4)
}
  0x30   :  { %s6186_s29 = scalar_lea.vmem %s106_s27, 32  ;;  %p6191_p6 = scmp.lt.s32.totalorder %s106_s27, %s106_s27 }
  0x31   :  { %p6187_p5 = scmp.ne.s32.totalorder %s106_s27, %s6186_s29  ;;  %p6192_p7 = scmp.lt.s32.totalorder %s6186_s29, %s6186_s29 }
  0x33   :  { %p6193_p8 = por %p6192_p7, %p6191_p6 }
  0x35   :  { %p6194_p9 = pnand %p6193_p8, %p6187_p5 }
  0x37   :  { %6197 = shalt.err (!%p6194_p9)
}
  0x38   :  { %108 = dma.hbm_to_vmem [thread:$0]  %s7149_s13, 32, %s106_s27, [#allocation12]  }
  0x39   :  { %s6311_s0 = smov [#allocation2]   ;;  %s6198_s4 = scalar_lea.hbm %s7138_s2, 24576 }
  0x3a   :  { %s36_s30 = sshll.u32 %s6311_s0, 4  ;;  %p6199_p10 = scmp.ne.s32.totalorder %s7138_s2, %s6198_s4  ;;  %s37_s30 = int_to_ptr.vmem [resolvable:$true] %s36_s30 }
  0x3b   :  { %p6202_p11 = scmp.lt.u32.totalorder %s6198_s4, %s7138_s2 }
  0x3d   :  { %p6204_p12 = pnand %p6202_p11, %p6199_p10 }
  0x3f   :  { %6207 = shalt.err (!%p6204_p12)
}
  0x40   :  { %s6208_s22 = scalar_lea.vmem %s37_s30, 24576  ;;  %p6213_p0 = scmp.lt.s32.totalorder %s37_s30, %s37_s30 }
  0x41   :  { %p6209_p13 = scmp.ne.s32.totalorder %s37_s30, %s6208_s22  ;;  %p6214_p1 = scmp.lt.s32.totalorder %s6208_s22, %s6208_s22 }
  0x43   :  { %p6215_p2 = por %p6214_p1, %p6213_p0 }
  0x45   :  { %p6216_p3 = pnand %p6215_p2, %p6209_p13 }
  0x47   :  { %6219 = shalt.err (!%p6216_p3)
}
  0x48   :  { %s6312_s13 = smov 64   ;;  %s6313_s27 = smov 4  }
  0x49   :  { %42 = dma.hbm_to_vmem [thread:$0]  %s7138_s2, 24576, %s37_s30, [#allocation3], %s6312_s13, %s6312_s13, %s6313_s27  }
  0x4a   :  { %s6314_s26 = smov [#allocation7]   ;;  %s6315_s29 = smov [#allocation10]  }
  0x4b   :  { %s69_s28 = sshll.u32 %s6314_s26, 4  ;;  %s88_s9 = sshll.u32 %s6315_s29, 4  ;;  %s70_s28 = int_to_ptr.vmem [resolvable:$true] %s69_s28  ;;  %s6461_s9 = int_to_ptr.vmem [resolvable:$true] %s88_s9 }
  0x4c   :  { %s6220_s18 = scalar_lea.hbm %s7144_s8, 32 }
  0x4d   :  { %p6221_p4 = scmp.ne.s32.totalorder %s7144_s8, %s6220_s18  ;;  %p6224_p5 = scmp.lt.u32.totalorder %s6220_s18, %s7144_s8 }
  0x4f   :  { %p6226_p6 = pnand %p6224_p5, %p6221_p4 }
  0x51   :  { %6229 = shalt.err (!%p6226_p6)
}
  0x52   :  { %s6230_s2 = scalar_lea.vmem %s70_s28, 32  ;;  %p6235_p8 = scmp.lt.s32.totalorder %s70_s28, %s70_s28 }
  0x53   :  { %p6231_p7 = scmp.ne.s32.totalorder %s70_s28, %s6230_s2  ;;  %p6236_p9 = scmp.lt.s32.totalorder %s6230_s2, %s6230_s2 }
  0x55   :  { %p6237_p10 = por %p6236_p9, %p6235_p8 }
  0x57   :  { %p6238_p11 = pnand %p6237_p10, %p6231_p7 }
  0x59   :  { %6241 = shalt.err (!%p6238_p11)
}
  0x5a   :  { %72 = dma.hbm_to_vmem [thread:$0]  %s7144_s8, 32, %s70_s28, [#allocation6]  }
  0x5b   :  { %s6242_s17 = scalar_lea.hbm %s7146_s10, 2048 }
  0x5c   :  { %p6243_p12 = scmp.ne.s32.totalorder %s7146_s10, %s6242_s17  ;;  %p6246_p13 = scmp.lt.u32.totalorder %s6242_s17, %s7146_s10 }
  0x5e   :  { %p6248_p0 = pnand %p6246_p13, %p6243_p12 }
  0x60   :  { %6251 = shalt.err (!%p6248_p0)
}
  0x61   :  { %s6252_s0 = scalar_lea.vmem %s6461_s9, 2048  ;;  %p6257_p2 = scmp.lt.s32.totalorder %s6461_s9, %s6461_s9 }
  0x62   :  { %p6253_p1 = scmp.ne.s32.totalorder %s6461_s9, %s6252_s0  ;;  %p6258_p3 = scmp.lt.s32.totalorder %s6252_s0, %s6252_s0 }
  0x64   :  { %p6259_p4 = por %p6258_p3, %p6257_p2 }
  0x66   :  { %p6260_p5 = pnand %p6259_p4, %p6253_p1 }
  0x68   :  { %6263 = shalt.err (!%p6260_p5)
}
  0x69   :  { %94 = dma.hbm_to_vmem [thread:$0]  %s7146_s10, 2048, %s6461_s9, [#allocation9], %s6312_s13, %s6312_s13, %s6313_s27  }
  0x6a   :  { %s6316_s18 = smov [#allocation13]   ;;  %s6264_s1 = scalar_lea.hbm %s7151_s15, 2048 }
  0x6b   :  { %s116_s19 = sshll.u32 %s6316_s18, 4  ;;  %p6265_p6 = scmp.ne.s32.totalorder %s7151_s15, %s6264_s1  ;;  %s117_s19 = int_to_ptr.vmem [resolvable:$true] %s116_s19 }
  0x6c   :  { %p6268_p7 = scmp.lt.u32.totalorder %s6264_s1, %s7151_s15 }
  0x6e   :  { %p6270_p8 = pnand %p6268_p7, %p6265_p6 }
  0x70   :  { %6273 = shalt.err (!%p6270_p8)
}
  0x71   :  { %s6274_s22 = scalar_lea.vmem %s117_s19, 2048  ;;  %p6279_p10 = scmp.lt.s32.totalorder %s117_s19, %s117_s19 }
  0x72   :  { %p6275_p9 = scmp.ne.s32.totalorder %s117_s19, %s6274_s22  ;;  %p6280_p11 = scmp.lt.s32.totalorder %s6274_s22, %s6274_s22 }
  0x74   :  { %p6281_p12 = por %p6280_p11, %p6279_p10 }
  0x76   :  { %p6282_p13 = pnand %p6281_p12, %p6275_p9 }
  0x78   :  { %6285 = shalt.err (!%p6282_p13)
}
  0x79   :  { %122 = dma.hbm_to_vmem [thread:$0]  %s7151_s15, 2048, %s117_s19, [#allocation12], %s6312_s13, %s6312_s13, %s6313_s27  }
  0x7a   :  { %6296 = dma.done.wait [#allocation3], 24576  }
  0x7b   :  { %6297 = vsyncadd [#allocation3], 4294942720 }
  0x7c   :  { %6298 = dma.done.wait [#allocation6], 2080  }
  0x7d   :  { %6299 = vsyncadd [#allocation6], 4294965216 }
  0x7e   :  { %6300 = dma.done.wait [#allocation9], 2080  }
  0x7f   :  { %6301 = vsyncadd [#allocation9], 4294965216 }
  0x80   :  { %6302 = dma.done.wait [#allocation12], 2080  }
  0x81   :  { %6303 = vsyncadd [#allocation12], 4294965216  ;;  %v5677_v0 = vld [vmem:[#allocation2 + $0x40] sm:$0xff]   ;;  %v5681_v4 = vld [vmem:[#allocation2 + $0x48] sm:$0xff]   ;;  %v6317_v22 = vmov 1966171168   ;;  %v541_v24 = vlaneseq }
  0x82   :  { %v5678_v1 = vld [vmem:[#allocation2 + $0xc0] sm:$0xff]   ;;  %5199 = vmatprep.subr.bf16.mxu0 %v5677_v0  ;;  %v5682_v5 = vld [vmem:[#allocation2 + $0xc8] sm:$0xff]   ;;  %v5685_v8 = vld [vmem:[#allocation2 + $0x50] sm:$0xff]   ;;  %v539_v23 = vunpack.c.l.s4 %v6317_v22  ;;  %s7160_s27 = sld [smem:[#allocation20_spill]]  ;;  %vm3633_vm0 = vcmask 1041408   ;;  %vm3775_vm1 = vcmask 1043456  }
  0x83   :  { %v5679_v2 = vld [vmem:[#allocation2] sm:$0xff]   ;;  %5221 = vmatprep.subr.bf16.mxu1 %v5678_v1  ;;  %v5683_v6 = vld [vmem:[#allocation2 + $0x8] sm:$0xff]   ;;  %v5686_v9 = vld [vmem:[#allocation2 + $0xd0] sm:$0xff]   ;;  %v6510_v30 = vshrl.u32 %v541_v24, 7  ;;  %vm4764_vm2 = vcmask 3072   ;;  %s7162_s1 = sld [smem:[#allocation22_spill]] }
  0x84   :  { %v5680_v3 = vld [vmem:[#allocation2 + $0x80] sm:$0xff]   ;;  %5200 = vmatpush3.bf16.msra.mxu0 %v5679_v2  ;;  %v5684_v7 = vld [vmem:[#allocation2 + $0x88] sm:$0xff]   ;;  %v5687_v10 = vld [vmem:[#allocation2 + $0x10] sm:$0xff]   ;;  %v540_v29 = vunpack.c.0.s8 %v539_v23 }
  0x85   :  { %5222 = vmatpush3.bf16.msra.mxu1 %v5680_v3  ;;  %5201 = vmatprep.subr.bf16.mxu0 %v5681_v4  ;;  %v5688_v11 = vld [vmem:[#allocation2 + $0x90] sm:$0xff]   ;;  %v5689_v12 = vld [vmem:[#allocation2 + $0x58] sm:$0xff]   ;;  %v5693_v16 = vld [vmem:[#allocation2 + $0x60] sm:$0xff]  }
  0x86   :  { %5223 = vmatprep.subr.bf16.mxu1 %v5682_v5  ;;  %v5690_v13 = vld [vmem:[#allocation2 + $0xd8] sm:$0xff]   ;;  %v5694_v17 = vld [vmem:[#allocation2 + $0xe0] sm:$0xff]   ;;  %v5697_v20 = vld [vmem:[#allocation2 + $0x68] sm:$0xff]   ;;  %v6513_v35 = vsub.s32 %v540_v29, %v6510_v30 }
  0x87   :  { %v5691_v14 = vld [vmem:[#allocation2 + $0x18] sm:$0xff]   ;;  %v5695_v18 = vld [vmem:[#allocation2 + $0x20] sm:$0xff]   ;;  %v5698_v21 = vld [vmem:[#allocation2 + $0xe8] sm:$0xff]  }
  0x88   :  { %5202 = vmatpush3.bf16.msra.mxu0 %v5683_v6  ;;  %v5692_v15 = vld [vmem:[#allocation2 + $0x98] sm:$0xff]   ;;  %v5696_v19 = vld [vmem:[#allocation2 + $0xa0] sm:$0xff]   ;;  %v5699_v25 = vld [vmem:[#allocation2 + $0x28] sm:$0xff]  }
  0x89   :  { %5224 = vmatpush3.bf16.msra.mxu1 %v5684_v7  ;;  %5203 = vmatprep.subr.bf16.mxu0 %v5685_v8  ;;  %v5700_v26 = vld [vmem:[#allocation2 + $0xa8] sm:$0xff]   ;;  %v5701_v27 = vld [vmem:[#allocation2 + $0x70] sm:$0xff]   ;;  %v5705_v33 = vld [vmem:[#allocation2 + $0x78] sm:$0xff]   ;;  %s6286_s2 = scalar_lea.hbm %s7162_s1, 16 }
  0x8a   :  { %5225 = vmatprep.subr.bf16.mxu1 %v5686_v9  ;;  %v5702_v28 = vld [vmem:[#allocation2 + $0xf0] sm:$0xff]   ;;  %v5706_v34 = vld [vmem:[#allocation2 + $0xf8] sm:$0xff]   ;;  %v147_v38 = vld [vmem:[%s7160_s27] sm:$0xff]  ;;  %p6287_p0 = scmp.ne.s32.totalorder %s7162_s1, %s6286_s2  ;;  %p6290_p1 = scmp.lt.u32.totalorder %s6286_s2, %s7162_s1 }
  0x8b   :  { %v5703_v31 = vld [vmem:[#allocation2 + $0x30] sm:$0xff]   ;;  %v5707_v36 = vld [vmem:[#allocation2 + $0x38] sm:$0xff]   ;;  %v537_v39 = vcombine.high %v147_v38, %v147_v38  ;;  %v544_v40 = vrot.slane %v147_v38, %v6513_v35  ;;  %v5710_v41 = vld [vmem:[#allocation2 + $0x140] sm:$0xff]  }
  0x8c   :  { %5204 = vmatpush3.bf16.msra.mxu0 %v5687_v10  ;;  %v5704_v32 = vld [vmem:[#allocation2 + $0xb0] sm:$0xff]   ;;  %v5708_v37 = vld [vmem:[#allocation2 + $0xb8] sm:$0xff]   ;;  %v5711_v42 = vld [vmem:[#allocation2 + $0x1c0] sm:$0xff]   ;;  %p6292_p2 = pnand %p6290_p1, %p6287_p0 }
  0x8d   :  { %5226 = vmatpush3.bf16.msra.mxu1 %v5688_v11  ;;  %5205 = vmatprep.subr.bf16.mxu0 %v5689_v12  ;;  %v552_v43 = vcombine.high %v544_v40, %v544_v40  ;;  %v560_v44 = vrot.slane %v544_v40, %v6513_v35  ;;  %v6521_v45 = vrot.slane %v537_v39, %v6513_v35  ;;  %v5712_v46 = vld [vmem:[#allocation2 + $0x100] sm:$0xff]   ;;  %v5714_v51 = vld [vmem:[#allocation2 + $0x148] sm:$0xff]   ;;  %v5718_v58 = vld [vmem:[#allocation2 + $0x150] sm:$0xff]  }
  0x8e   :  { %5227 = vmatprep.subr.bf16.mxu1 %v5690_v13  ;;  %v5713_v48 = vld [vmem:[#allocation2 + $0x180] sm:$0xff]   ;;  %v5715_v53 = vld [vmem:[#allocation2 + $0x1c8] sm:$0xff]   ;;  %v5719_v59 = vld [vmem:[#allocation2 + $0x1d0] sm:$0xff]  }
  0x8f   :  { %v574_v47 = vrot.slane %v552_v43, %v6513_v35  ;;  %v553_v49 = vcombine.high %v6521_v45, %v6521_v45  ;;  %v582_v50 = vcombine.high %v560_v44, %v560_v44  ;;  %v5716_v55 = vld [vmem:[#allocation2 + $0x108] sm:$0xff]   ;;  %v5720_v60 = vld [vmem:[#allocation2 + $0x110] sm:$0xff]   ;;  %v5722_v62 = vld [vmem:[#allocation2 + $0x158] sm:$0xff]  }
  0x90   :  { %5206 = vmatpush3.bf16.msra.mxu0 %v5691_v14  ;;  %v5717_v56 = vld [vmem:[#allocation2 + $0x188] sm:$0xff]   ;;  %v5721_v61 = vld [vmem:[#allocation2 + $0x190] sm:$0xff]   ;;  %v5723_v63 = vld [vmem:[#allocation2 + $0x1d8] sm:$0xff]  }
  0x91   :  { %5228 = vmatpush3.bf16.msra.mxu1 %v5692_v15  ;;  %5207 = vmatprep.subr.bf16.mxu0 %v5693_v16  ;;  %v584_v52 = vcombine.high %v574_v47, %v574_v47  ;;  %v581_v54 = vrot.slane %v553_v49, %v6513_v35  ;;  %v5724_v0 = vld [vmem:[#allocation2 + $0x118] sm:$0xff]   ;;  %v5726_v2 = vld [vmem:[#allocation2 + $0x160] sm:$0xff]   ;;  %v5730_v6 = vld [vmem:[#allocation2 + $0x168] sm:$0xff]  }
  0x92   :  { %5229 = vmatprep.subr.bf16.mxu1 %v5694_v17  ;;  %1892 = vmatprep.mubr.bf16.mxu0 %v574_v47  ;;  %v5725_v1 = vld [vmem:[#allocation2 + $0x198] sm:$0xff]   ;;  %v5727_v3 = vld [vmem:[#allocation2 + $0x1e0] sm:$0xff]   ;;  %v5731_v7 = vld [vmem:[#allocation2 + $0x1e8] sm:$0xff]  }
  0x93   :  { %1932 = vmatprep.mubr.bf16.mxu1 %v584_v52  ;;  %v585_v57 = vcombine.high %v581_v54, %v581_v54  ;;  %v5728_v4 = vld [vmem:[#allocation2 + $0x120] sm:$0xff]   ;;  %v5732_v8 = vld [vmem:[#allocation2 + $0x128] sm:$0xff]   ;;  %v5734_v10 = vld [vmem:[#allocation2 + $0x170] sm:$0xff]  }
  0x94   :  { %5208 = vmatpush3.bf16.msra.mxu0 %v5695_v18  ;;  %v5729_v5 = vld [vmem:[#allocation2 + $0x1a0] sm:$0xff]   ;;  %v5733_v9 = vld [vmem:[#allocation2 + $0x1a8] sm:$0xff]   ;;  %v5735_v11 = vld [vmem:[#allocation2 + $0x1f0] sm:$0xff]   ;;  %v567_v18 = vrot.slane %v6521_v45, %v6513_v35 }
  0x95   :  { %5230 = vmatpush3.bf16.msra.mxu1 %v5696_v19  ;;  %5209 = vmatprep.subr.bf16.mxu0 %v5697_v20  ;;  %v5736_v12 = vld [vmem:[#allocation2 + $0x130] sm:$0xff]   ;;  %v5738_v14 = vld [vmem:[#allocation2 + $0x178] sm:$0xff]   ;;  %v5742_v19 = vld [vmem:[#allocation2 + $0x240] sm:$0xff]  }
  0x96   :  { %5231 = vmatprep.subr.bf16.mxu1 %v5698_v21  ;;  %v5737_v13 = vld [vmem:[#allocation2 + $0x1b0] sm:$0xff]   ;;  %v5739_v15 = vld [vmem:[#allocation2 + $0x1f8] sm:$0xff]   ;;  %v5743_v20 = vld [vmem:[#allocation2 + $0x2c0] sm:$0xff]   ;;  %v583_v23 = vcombine.high %v567_v18, %v567_v18 }
  0x97   :  { %v5740_v16 = vld [vmem:[#allocation2 + $0x138] sm:$0xff]   ;;  %v5744_v21 = vld [vmem:[#allocation2 + $0x200] sm:$0xff]   ;;  %v5746_v24 = vld [vmem:[#allocation2 + $0x248] sm:$0xff]  }
  0x98   :  { %5210 = vmatpush3.bf16.msra.mxu0 %v5699_v25  ;;  %v5741_v17 = vld [vmem:[#allocation2 + $0x1b8] sm:$0xff]   ;;  %v5745_v22 = vld [vmem:[#allocation2 + $0x280] sm:$0xff]   ;;  %v5747_v25 = vld [vmem:[#allocation2 + $0x2c8] sm:$0xff]  }
  0x99   :  { %5232 = vmatpush3.bf16.msra.mxu1 %v5700_v26  ;;  %5211 = vmatprep.subr.bf16.mxu0 %v5701_v27  ;;  %v5748_v26 = vld [vmem:[#allocation2 + $0x208] sm:$0xff]   ;;  %v5751_v29 = vld [vmem:[#allocation2 + $0x2d0] sm:$0xff]   ;;  %v5758_v38 = vld [vmem:[#allocation2 + $0x260] sm:$0xff]  }
  0x9a   :  { %5233 = vmatprep.subr.bf16.mxu1 %v5702_v28  ;;  %v5749_v27 = vld [vmem:[#allocation2 + $0x288] sm:$0xff]   ;;  %v5750_v28 = vld [vmem:[#allocation2 + $0x250] sm:$0xff]   ;;  %v5759_v39 = vld [vmem:[#allocation2 + $0x2e0] sm:$0xff]  }
  0x9b   :  { %v5760_v40 = vld [vmem:[#allocation2 + $0x220] sm:$0xff]   ;;  %v5763_v43 = vld [vmem:[#allocation2 + $0x2e8] sm:$0xff]   ;;  %v5767_v47 = vld [vmem:[#allocation2 + $0x2f0] sm:$0xff]  }
  0x9c   :  { %5212 = vmatpush3.bf16.msra.mxu0 %v5703_v31  ;;  %v5752_v31 = vld [vmem:[#allocation2 + $0x210] sm:$0xff]   ;;  %v5765_v45 = vld [vmem:[#allocation2 + $0x2a8] sm:$0xff]   ;;  %v5772_v52 = vld [vmem:[#allocation2 + $0x238] sm:$0xff]  }
  0x9d   :  { %5234 = vmatpush3.bf16.msra.mxu1 %v5704_v32  ;;  %5213 = vmatprep.subr.bf16.mxu0 %v5705_v33  ;;  %v5753_v32 = vld [vmem:[#allocation2 + $0x290] sm:$0xff]   ;;  %v5754_v33 = vld [vmem:[#allocation2 + $0x258] sm:$0xff]  }
  0x9e   :  { %5235 = vmatprep.subr.bf16.mxu1 %v5706_v34  ;;  %v5755_v34 = vld [vmem:[#allocation2 + $0x2d8] sm:$0xff]   ;;  %v5769_v49 = vld [vmem:[#allocation2 + $0x2b0] sm:$0xff]  }
  0xa0   :  { %5214 = vmatpush3.bf16.msra.mxu0 %v5707_v36  ;;  %v5756_v36 = vld [vmem:[#allocation2 + $0x218] sm:$0xff]  }
  0xa1   :  { %5236 = vmatpush3.bf16.msra.mxu1 %v5708_v37  ;;  %5243 = vmatprep.subr.bf16.mxu0 %v5710_v41  ;;  %v5757_v37 = vld [vmem:[#allocation2 + $0x298] sm:$0xff]   ;;  %v5761_v41 = vld [vmem:[#allocation2 + $0x2a0] sm:$0xff]  }
  0xa2   :  { %5265 = vmatprep.subr.bf16.mxu1 %v5711_v42  ;;  %v5762_v42 = vld [vmem:[#allocation2 + $0x268] sm:$0xff]  }
  0xa3   :  { %1893 = vmatmul.mubr.bf16.vlgmr.msra.gmra.mrb[0].mxu0 %v560_v44  ;;  %v5764_v44 = vld [vmem:[#allocation2 + $0x228] sm:$0xff]  }
  0xa4   :  { %5244 = vmatpush3.bf16.msra.mxu0 %v5712_v46  ;;  %1933 = vmatmul.mubr.bf16.vlgmr.msra.gmra.mrb[0].mxu1 %v582_v50  ;;  %v5766_v46 = vld [vmem:[#allocation2 + $0x270] sm:$0xff]   ;;  %v5770_v50 = vld [vmem:[#allocation2 + $0x278] sm:$0xff]  }
  0xa5   :  { %5245 = vmatprep.subr.bf16.mxu0 %v5714_v51  ;;  %5266 = vmatpush3.bf16.msra.mxu1 %v5713_v48  ;;  %v5768_v48 = vld [vmem:[#allocation2 + $0x230] sm:$0xff]   ;;  %v5771_v51 = vld [vmem:[#allocation2 + $0x2f8] sm:$0xff]  }
  0xa6   :  { %1972 = vmatprep.mubr.bf16.mxu0 %v581_v54  ;;  %5267 = vmatprep.subr.bf16.mxu1 %v5715_v53  ;;  %v148_v53 = vld [vmem:[%s7160_s27 + $0x8] sm:$0xff]  ;;  %v5773_v54 = vld [vmem:[#allocation2 + $0x2b8] sm:$0xff]  }
  0xa7   :  { %2012 = vmatprep.mubr.bf16.mxu1 %v585_v57  ;;  %v5774_v57 = vld [vmem:[#allocation2 + $0x340] sm:$0xff]  }
  0xa8   :  { %5246 = vmatpush3.bf16.msra.mxu0 %v5716_v55  ;;  %v593_v55 = vrot.slane %v148_v53, %v6513_v35 }
  0xa9   :  { %5247 = vmatprep.subr.bf16.mxu0 %v5718_v58  ;;  %5268 = vmatpush3.bf16.msra.mxu1 %v5717_v56  ;;  %v586_v56 = vcombine.high %v148_v53, %v148_v53  ;;  %v5822_v53 = vld [vmem:[#allocation2 + $0x498] sm:$0xff]  }
  0xaa   :  { %5269 = vmatprep.subr.bf16.mxu1 %v5719_v59  ;;  %v601_v58 = vcombine.high %v593_v55, %v593_v55  ;;  %v609_v59 = vrot.slane %v593_v55, %v6513_v35  ;;  %v5824_v55 = vld [vmem:[#allocation2 + $0x4e0] sm:$0xff]  }
  0xac   :  { %5248 = vmatpush3.bf16.msra.mxu0 %v5720_v60  ;;  %v5775_v60 = vld [vmem:[#allocation2 + $0x3c0] sm:$0xff]  }
  0xad   :  { %5249 = vmatprep.subr.bf16.mxu0 %v5722_v62  ;;  %5270 = vmatpush3.bf16.msra.mxu1 %v5721_v61  ;;  %v6535_v61 = vrot.slane %v586_v56, %v6513_v35  ;;  %v5776_v62 = vld [vmem:[#allocation2 + $0x300] sm:$0xff]  }
  0xae   :  { %5271 = vmatprep.subr.bf16.mxu1 %v5723_v63  ;;  %v623_v63 = vrot.slane %v601_v58, %v6513_v35  ;;  %v5825_v56 = vld [vmem:[#allocation2 + $0x420] sm:$0xff]   ;;  %v5827_v58 = vld [vmem:[#allocation2 + $0x468] sm:$0xff]  }
  0xb0   :  { %5250 = vmatpush3.bf16.msra.mxu0 %v5724_v0  ;;  %v5777_v0 = vld [vmem:[#allocation2 + $0x380] sm:$0xff]  }
  0xb1   :  { %5251 = vmatprep.subr.bf16.mxu0 %v5726_v2  ;;  %5272 = vmatpush3.bf16.msra.mxu1 %v5725_v1  ;;  %v602_v1 = vcombine.high %v6535_v61, %v6535_v61  ;;  %v631_v2 = vcombine.high %v609_v59, %v609_v59 }
  0xb2   :  { %5273 = vmatprep.subr.bf16.mxu1 %v5727_v3  ;;  %v5778_v3 = vld [vmem:[#allocation2 + $0x348] sm:$0xff]  }
  0xb4   :  { %5252 = vmatpush3.bf16.msra.mxu0 %v5728_v4  ;;  %v633_v4 = vcombine.high %v623_v63, %v623_v63 }
  0xb5   :  { %5253 = vmatprep.subr.bf16.mxu0 %v5730_v6  ;;  %5274 = vmatpush3.bf16.msra.mxu1 %v5729_v5  ;;  %v5779_v5 = vld [vmem:[#allocation2 + $0x3c8] sm:$0xff]   ;;  %v630_v6 = vrot.slane %v602_v1, %v6513_v35  ;;  %v5834_v1 = vld [vmem:[#allocation2 + $0x4b0] sm:$0xff]  }
  0xb6   :  { %5275 = vmatprep.subr.bf16.mxu1 %v5731_v7  ;;  %v5780_v7 = vld [vmem:[#allocation2 + $0x308] sm:$0xff]  }
  0xb8   :  { %5254 = vmatpush3.bf16.msra.mxu0 %v5732_v8  ;;  %v5781_v8 = vld [vmem:[#allocation2 + $0x388] sm:$0xff]  }
  0xb9   :  { %5255 = vmatprep.subr.bf16.mxu0 %v5734_v10  ;;  %5276 = vmatpush3.bf16.msra.mxu1 %v5733_v9  ;;  %v634_v9 = vcombine.high %v630_v6, %v630_v6  ;;  %v5782_v10 = vld [vmem:[#allocation2 + $0x350] sm:$0xff]  }
  0xba   :  { %5277 = vmatprep.subr.bf16.mxu1 %v5735_v11  ;;  %v5783_v11 = vld [vmem:[#allocation2 + $0x3d0] sm:$0xff]  }
  0xbc   :  { %5256 = vmatpush3.bf16.msra.mxu0 %v5736_v12  ;;  %v5784_v12 = vld [vmem:[#allocation2 + $0x310] sm:$0xff]  }
  0xbd   :  { %5257 = vmatprep.subr.bf16.mxu0 %v5738_v14  ;;  %5278 = vmatpush3.bf16.msra.mxu1 %v5737_v13  ;;  %v5785_v13 = vld [vmem:[#allocation2 + $0x390] sm:$0xff]   ;;  %v5786_v14 = vld [vmem:[#allocation2 + $0x358] sm:$0xff]  }
  0xbe   :  { %5279 = vmatprep.subr.bf16.mxu1 %v5739_v15  ;;  %v5787_v15 = vld [vmem:[#allocation2 + $0x3d8] sm:$0xff]  }
  0xc0   :  { %5258 = vmatpush3.bf16.msra.mxu0 %v5740_v16  ;;  %v5788_v16 = vld [vmem:[#allocation2 + $0x318] sm:$0xff]  }
  0xc1   :  { %5287 = vmatprep.subr.bf16.mxu0 %v5742_v19  ;;  %5280 = vmatpush3.bf16.msra.mxu1 %v5741_v17  ;;  %v5789_v17 = vld [vmem:[#allocation2 + $0x398] sm:$0xff]   ;;  %v5791_v19 = vld [vmem:[#allocation2 + $0x3e0] sm:$0xff]  }
  0xc2   :  { %5309 = vmatprep.subr.bf16.mxu1 %v5743_v20  ;;  %v5792_v20 = vld [vmem:[#allocation2 + $0x320] sm:$0xff]  }
  0xc3   :  { %1973 = vmatmul.mubr.bf16.vlgmr.msra.gmra.mrb[4].mxu0 %v567_v18  ;;  %v5790_v18 = vld [vmem:[#allocation2 + $0x360] sm:$0xff]  }
  0xc4   :  { %5288 = vmatpush3.bf16.msra.mxu0 %v5744_v21  ;;  %2013 = vmatmul.mubr.bf16.vlgmr.msra.gmra.mrb[4].mxu1 %v583_v23  ;;  %v5793_v21 = vld [vmem:[#allocation2 + $0x3a0] sm:$0xff]   ;;  %v5795_v23 = vld [vmem:[#allocation2 + $0x3e8] sm:$0xff]  }
  0xc5   :  { %5289 = vmatprep.subr.bf16.mxu0 %v5746_v24  ;;  %5310 = vmatpush3.bf16.msra.mxu1 %v5745_v22  ;;  %v5794_v22 = vld [vmem:[#allocation2 + $0x368] sm:$0xff]  }
  0xc6   :  { %5311 = vmatprep.subr.bf16.mxu1 %v5747_v25  ;;  %2052 = vmatprep.mubr.bf16.mxu0 %v623_v63  ;;  %v5796_v24 = vld [vmem:[#allocation2 + $0x328] sm:$0xff]   ;;  %v5832_v63 = vld [vmem:[#allocation2 + $0x4f0] sm:$0xff]  }
  0xc7   :  { %2092 = vmatprep.mubr.bf16.mxu1 %v633_v4  ;;  %v5797_v25 = vld [vmem:[#allocation2 + $0x3a8] sm:$0xff]   ;;  %v5837_v4 = vld [vmem:[#allocation2 + $0x438] sm:$0xff]  }
  0xc8   :  { %5290 = vmatpush3.bf16.msra.mxu0 %v5748_v26  ;;  %v5798_v26 = vld [vmem:[#allocation2 + $0x370] sm:$0xff]  }
  0xc9   :  { %5291 = vmatprep.subr.bf16.mxu0 %v5750_v28  ;;  %5312 = vmatpush3.bf16.msra.mxu1 %v5749_v27  ;;  %v5799_v27 = vld [vmem:[#allocation2 + $0x3f0] sm:$0xff]  }
  0xca   :  { %5313 = vmatprep.subr.bf16.mxu1 %v5751_v29  ;;  %v5800_v28 = vld [vmem:[#allocation2 + $0x330] sm:$0xff]  }
  0xcb   :  { %v5801_v29 = vld [vmem:[#allocation2 + $0x3b0] sm:$0xff]  }
  0xcc   :  { %5292 = vmatpush3.bf16.msra.mxu0 %v5752_v31  ;;  %v5802_v31 = vld [vmem:[#allocation2 + $0x378] sm:$0xff]  }
  0xcd   :  { %5293 = vmatprep.subr.bf16.mxu0 %v5754_v33  ;;  %5314 = vmatpush3.bf16.msra.mxu1 %v5753_v32  ;;  %v5803_v32 = vld [vmem:[#allocation2 + $0x3f8] sm:$0xff]  }
  0xce   :  { %5315 = vmatprep.subr.bf16.mxu1 %v5755_v34  ;;  %v5804_v33 = vld [vmem:[#allocation2 + $0x338] sm:$0xff]  }
  0xcf   :  { %v5805_v34 = vld [vmem:[#allocation2 + $0x3b8] sm:$0xff]  }
  0xd0   :  { %5294 = vmatpush3.bf16.msra.mxu0 %v5756_v36  ;;  %v616_v36 = vrot.slane %v6535_v61, %v6513_v35  ;;  %v5830_v61 = vld [vmem:[#allocation2 + $0x4a8] sm:$0xff]  }
  0xd1   :  { %5295 = vmatprep.subr.bf16.mxu0 %v5758_v38  ;;  %5316 = vmatpush3.bf16.msra.mxu1 %v5757_v37  ;;  %v5807_v37 = vld [vmem:[#allocation2 + $0x440] sm:$0xff]  }
  0xd2   :  { %5317 = vmatprep.subr.bf16.mxu1 %v5759_v39  ;;  %v5808_v38 = vld [vmem:[#allocation2 + $0x4c0] sm:$0xff]  }
  0xd3   :  { %v5809_v39 = vld [vmem:[#allocation2 + $0x400] sm:$0xff]  }
  0xd4   :  { %5296 = vmatpush3.bf16.msra.mxu0 %v5760_v40  ;;  %v5810_v40 = vld [vmem:[#allocation2 + $0x480] sm:$0xff]  }
  0xd5   :  { %5297 = vmatprep.subr.bf16.mxu0 %v5762_v42  ;;  %5318 = vmatpush3.bf16.msra.mxu1 %v5761_v41  ;;  %v632_v41 = vcombine.high %v616_v36, %v616_v36  ;;  %v5811_v42 = vld [vmem:[#allocation2 + $0x448] sm:$0xff]  }
  0xd6   :  { %5319 = vmatprep.subr.bf16.mxu1 %v5763_v43  ;;  %v5812_v43 = vld [vmem:[#allocation2 + $0x4c8] sm:$0xff]  }
  0xd8   :  { %5298 = vmatpush3.bf16.msra.mxu0 %v5764_v44  ;;  %v5813_v44 = vld [vmem:[#allocation2 + $0x408] sm:$0xff]  }
  0xd9   :  { %5299 = vmatprep.subr.bf16.mxu0 %v5766_v46  ;;  %5320 = vmatpush3.bf16.msra.mxu1 %v5765_v45  ;;  %v5814_v45 = vld [vmem:[#allocation2 + $0x488] sm:$0xff]   ;;  %v5815_v46 = vld [vmem:[#allocation2 + $0x450] sm:$0xff]  }
  0xda   :  { %5321 = vmatprep.subr.bf16.mxu1 %v5767_v47  ;;  %v5816_v47 = vld [vmem:[#allocation2 + $0x4d0] sm:$0xff]  }
  0xdc   :  { %5300 = vmatpush3.bf16.msra.mxu0 %v5768_v48  ;;  %v5817_v48 = vld [vmem:[#allocation2 + $0x410] sm:$0xff]  }
  0xdd   :  { %5301 = vmatprep.subr.bf16.mxu0 %v5770_v50  ;;  %5322 = vmatpush3.bf16.msra.mxu1 %v5769_v49  ;;  %v5818_v49 = vld [vmem:[#allocation2 + $0x490] sm:$0xff]   ;;  %v5819_v50 = vld [vmem:[#allocation2 + $0x458] sm:$0xff]  }
  0xde   :  { %5323 = vmatprep.subr.bf16.mxu1 %v5771_v51  ;;  %v5820_v51 = vld [vmem:[#allocation2 + $0x4d8] sm:$0xff]  }
  0xe0   :  { %5302 = vmatpush3.bf16.msra.mxu0 %v5772_v52  ;;  %v5821_v52 = vld [vmem:[#allocation2 + $0x418] sm:$0xff]  }
  0xe1   :  { %5331 = vmatprep.subr.bf16.mxu0 %v5774_v57  ;;  %5324 = vmatpush3.bf16.msra.mxu1 %v5773_v54  ;;  %v5823_v54 = vld [vmem:[#allocation2 + $0x460] sm:$0xff]  }
  0xe2   :  { %5353 = vmatprep.subr.bf16.mxu1 %v5775_v60  ;;  %v5826_v57 = vld [vmem:[#allocation2 + $0x4a0] sm:$0xff]   ;;  %v5829_v60 = vld [vmem:[#allocation2 + $0x428] sm:$0xff]  }
  0xe3   :  { %2053 = vmatmul.mubr.bf16.vlgmr.msra.gmra.mrb[8].mxu0 %v609_v59  ;;  %v5828_v59 = vld [vmem:[#allocation2 + $0x4e8] sm:$0xff]  }
  0xe4   :  { %5332 = vmatpush3.bf16.msra.mxu0 %v5776_v62  ;;  %2093 = vmatmul.mubr.bf16.vlgmr.msra.gmra.mrb[8].mxu1 %v631_v2  ;;  %v5831_v62 = vld [vmem:[#allocation2 + $0x470] sm:$0xff]   ;;  %v5835_v2 = vld [vmem:[#allocation2 + $0x478] sm:$0xff]  }
  0xe5   :  { %5333 = vmatprep.subr.bf16.mxu0 %v5778_v3  ;;  %5354 = vmatpush3.bf16.msra.mxu1 %v5777_v0  ;;  %v5833_v0 = vld [vmem:[#allocation2 + $0x430] sm:$0xff]   ;;  %v5836_v3 = vld [vmem:[#allocation2 + $0x4f8] sm:$0xff]  }
  0xe6   :  { %2132 = vmatprep.mubr.bf16.mxu0 %v630_v6  ;;  %5355 = vmatprep.subr.bf16.mxu1 %v5779_v5  ;;  %v149_v5 = vld [vmem:[%s7160_s27 + $0x10] sm:$0xff]  ;;  %v5838_v6 = vld [vmem:[#allocation2 + $0x4b8] sm:$0xff]   ;;  %s7161_s27 = sld [smem:[#allocation21_spill]] }
  0xe7   :  { %2172 = vmatprep.mubr.bf16.mxu1 %v634_v9  ;;  %v5839_v9 = vld [vmem:[#allocation2 + $0x540] sm:$0xff]  }
  0xe8   :  { %5334 = vmatpush3.bf16.msra.mxu0 %v5780_v7  ;;  %v642_v7 = vrot.slane %v149_v5, %v6513_v35 }
  0xe9   :  { %5335 = vmatprep.subr.bf16.mxu0 %v5782_v10  ;;  %5356 = vmatpush3.bf16.msra.mxu1 %v5781_v8  ;;  %v635_v8 = vcombine.high %v149_v5, %v149_v5  ;;  %v5887_v5 = vld [vmem:[%s7139_s3 + $0x98] sm:$0xff]  }
  0xea   :  { %5357 = vmatprep.subr.bf16.mxu1 %v5783_v11  ;;  %v650_v10 = vcombine.high %v642_v7, %v642_v7  ;;  %v658_v11 = vrot.slane %v642_v7, %v6513_v35  ;;  %v5889_v7 = vld [vmem:[%s7139_s3 + $0xe0] sm:$0xff]  }
  0xec   :  { %5336 = vmatpush3.bf16.msra.mxu0 %v5784_v12  ;;  %v5840_v12 = vld [vmem:[#allocation2 + $0x5c0] sm:$0xff]  }
  0xed   :  { %5337 = vmatprep.subr.bf16.mxu0 %v5786_v14  ;;  %5358 = vmatpush3.bf16.msra.mxu1 %v5785_v13  ;;  %v6549_v13 = vrot.slane %v635_v8, %v6513_v35  ;;  %v5841_v14 = vld [vmem:[#allocation2 + $0x500] sm:$0xff]  }
  0xee   :  { %5359 = vmatprep.subr.bf16.mxu1 %v5787_v15  ;;  %v672_v15 = vrot.slane %v650_v10, %v6513_v35  ;;  %v5890_v8 = vld [vmem:[%s7139_s3 + $0x20] sm:$0xff]   ;;  %v5892_v10 = vld [vmem:[%s7139_s3 + $0x68] sm:$0xff]  }
  0xf0   :  { %5338 = vmatpush3.bf16.msra.mxu0 %v5788_v16  ;;  %v5842_v16 = vld [vmem:[#allocation2 + $0x580] sm:$0xff]  }
  0xf1   :  { %5339 = vmatprep.subr.bf16.mxu0 %v5790_v18  ;;  %5360 = vmatpush3.bf16.msra.mxu1 %v5789_v17  ;;  %v651_v17 = vcombine.high %v6549_v13, %v6549_v13  ;;  %v680_v18 = vcombine.high %v658_v11, %v658_v11 }
  0xf2   :  { %5361 = vmatprep.subr.bf16.mxu1 %v5791_v19  ;;  %v5843_v19 = vld [vmem:[#allocation2 + $0x548] sm:$0xff]  }
  0xf4   :  { %5340 = vmatpush3.bf16.msra.mxu0 %v5792_v20  ;;  %v682_v20 = vcombine.high %v672_v15, %v672_v15 }
  0xf5   :  { %5341 = vmatprep.subr.bf16.mxu0 %v5794_v22  ;;  %5362 = vmatpush3.bf16.msra.mxu1 %v5793_v21  ;;  %v5844_v21 = vld [vmem:[#allocation2 + $0x5c8] sm:$0xff]   ;;  %v679_v22 = vrot.slane %v651_v17, %v6513_v35  ;;  %v5899_v17 = vld [vmem:[%s7139_s3 + $0xb0] sm:$0xff]  }
  0xf6   :  { %5363 = vmatprep.subr.bf16.mxu1 %v5795_v23  ;;  %v5845_v23 = vld [vmem:[#allocation2 + $0x508] sm:$0xff]  }
  0xf8   :  { %5342 = vmatpush3.bf16.msra.mxu0 %v5796_v24  ;;  %v5846_v24 = vld [vmem:[#allocation2 + $0x588] sm:$0xff]  }
  0xf9   :  { %5343 = vmatprep.subr.bf16.mxu0 %v5798_v26  ;;  %5364 = vmatpush3.bf16.msra.mxu1 %v5797_v25  ;;  %v683_v25 = vcombine.high %v679_v22, %v679_v22  ;;  %v5847_v26 = vld [vmem:[#allocation2 + $0x550] sm:$0xff]  }
  0xfa   :  { %5365 = vmatprep.subr.bf16.mxu1 %v5799_v27  ;;  %v5848_v27 = vld [vmem:[#allocation2 + $0x5d0] sm:$0xff]  }
  0xfc   :  { %5344 = vmatpush3.bf16.msra.mxu0 %v5800_v28  ;;  %v5849_v28 = vld [vmem:[#allocation2 + $0x510] sm:$0xff]  }
  0xfd   :  { %5345 = vmatprep.subr.bf16.mxu0 %v5802_v31  ;;  %5366 = vmatpush3.bf16.msra.mxu1 %v5801_v29  ;;  %v5850_v29 = vld [vmem:[#allocation2 + $0x590] sm:$0xff]   ;;  %v5851_v31 = vld [vmem:[#allocation2 + $0x558] sm:$0xff]  }
  0xfe   :  { %5367 = vmatprep.subr.bf16.mxu1 %v5803_v32  ;;  %v5852_v32 = vld [vmem:[#allocation2 + $0x5d8] sm:$0xff]  }
 0x100   :  { %5346 = vmatpush3.bf16.msra.mxu0 %v5804_v33  ;;  %v5853_v33 = vld [vmem:[#allocation2 + $0x518] sm:$0xff]  }
 0x101   :  { %5375 = vmatprep.subr.bf16.mxu0 %v5807_v37  ;;  %5368 = vmatpush3.bf16.msra.mxu1 %v5805_v34  ;;  %v5854_v34 = vld [vmem:[#allocation2 + $0x598] sm:$0xff]   ;;  %v5856_v37 = vld [vmem:[#allocation2 + $0x5e0] sm:$0xff]  }
 0x102   :  { %5397 = vmatprep.subr.bf16.mxu1 %v5808_v38  ;;  %v5857_v38 = vld [vmem:[#allocation2 + $0x520] sm:$0xff]  }
 0x103   :  { %2133 = vmatmul.mubr.bf16.vlgmr.msra.gmra.mrb[12].mxu0 %v616_v36  ;;  %v5855_v36 = vld [vmem:[#allocation2 + $0x560] sm:$0xff]  }
 0x104   :  { %5376 = vmatpush3.bf16.msra.mxu0 %v5809_v39  ;;  %2173 = vmatmul.mubr.bf16.vlgmr.msra.gmra.mrb[12].mxu1 %v632_v41  ;;  %v5858_v39 = vld [vmem:[#allocation2 + $0x5a0] sm:$0xff]   ;;  %v5860_v41 = vld [vmem:[#allocation2 + $0x5e8] sm:$0xff]  }
 0x105   :  { %5377 = vmatprep.subr.bf16.mxu0 %v5811_v42  ;;  %5398 = vmatpush3.bf16.msra.mxu1 %v5810_v40  ;;  %v5859_v40 = vld [vmem:[#allocation2 + $0x568] sm:$0xff]  }
 0x106   :  { %5399 = vmatprep.subr.bf16.mxu1 %v5812_v43  ;;  %2212 = vmatprep.mubr.bf16.mxu0 %v672_v15  ;;  %v5861_v42 = vld [vmem:[#allocation2 + $0x528] sm:$0xff]   ;;  %v5897_v15 = vld [vmem:[%s7139_s3 + $0xf0] sm:$0xff]  }
 0x107   :  { %2252 = vmatprep.mubr.bf16.mxu1 %v682_v20  ;;  %v5862_v43 = vld [vmem:[#allocation2 + $0x5a8] sm:$0xff]   ;;  %v5902_v20 = vld [vmem:[%s7139_s3 + $0x38] sm:$0xff]  }
 0x108   :  { %5378 = vmatpush3.bf16.msra.mxu0 %v5813_v44  ;;  %v5863_v44 = vld [vmem:[#allocation2 + $0x570] sm:$0xff]  }
 0x109   :  { %5379 = vmatprep.subr.bf16.mxu0 %v5815_v46  ;;  %5400 = vmatpush3.bf16.msra.mxu1 %v5814_v45  ;;  %v5864_v45 = vld [vmem:[#allocation2 + $0x5f0] sm:$0xff]  }
 0x10a   :  { %5401 = vmatprep.subr.bf16.mxu1 %v5816_v47  ;;  %v5865_v46 = vld [vmem:[#allocation2 + $0x530] sm:$0xff]  }
 0x10b   :  { %v5866_v47 = vld [vmem:[#allocation2 + $0x5b0] sm:$0xff]  }
 0x10c   :  { %5380 = vmatpush3.bf16.msra.mxu0 %v5817_v48  ;;  %v5867_v48 = vld [vmem:[#allocation2 + $0x578] sm:$0xff]  }
 0x10d   :  { %5381 = vmatprep.subr.bf16.mxu0 %v5819_v50  ;;  %5402 = vmatpush3.bf16.msra.mxu1 %v5818_v49  ;;  %v5868_v49 = vld [vmem:[#allocation2 + $0x5f8] sm:$0xff]  }
 0x10e   :  { %5403 = vmatprep.subr.bf16.mxu1 %v5820_v51  ;;  %v5869_v50 = vld [vmem:[#allocation2 + $0x538] sm:$0xff]  }
 0x10f   :  { %v5870_v51 = vld [vmem:[#allocation2 + $0x5b8] sm:$0xff]  }
 0x110   :  { %5382 = vmatpush3.bf16.msra.mxu0 %v5821_v52  ;;  %v665_v52 = vrot.slane %v6549_v13, %v6513_v35  ;;  %v5895_v13 = vld [vmem:[%s7139_s3 + $0xa8] sm:$0xff]  }
 0x111   :  { %5383 = vmatprep.subr.bf16.mxu0 %v5823_v54  ;;  %5404 = vmatpush3.bf16.msra.mxu1 %v5822_v53  ;;  %v5872_v53 = vld [vmem:[%s7139_s3 + $0x40] sm:$0xff]  }
 0x112   :  { %5405 = vmatprep.subr.bf16.mxu1 %v5824_v55  ;;  %v5873_v54 = vld [vmem:[%s7139_s3 + $0xc0] sm:$0xff]  }
 0x113   :  { %v5874_v55 = vld [vmem:[%s7139_s3] sm:$0xff]  }
 0x114   :  { %5384 = vmatpush3.bf16.msra.mxu0 %v5825_v56  ;;  %v5875_v56 = vld [vmem:[%s7139_s3 + $0x80] sm:$0xff]  }
 0x115   :  { %5385 = vmatprep.subr.bf16.mxu0 %v5827_v58  ;;  %5406 = vmatpush3.bf16.msra.mxu1 %v5826_v57  ;;  %v681_v57 = vcombine.high %v665_v52, %v665_v52  ;;  %v5876_v58 = vld [vmem:[%s7139_s3 + $0x48] sm:$0xff]  }
 0x116   :  { %5407 = vmatprep.subr.bf16.mxu1 %v5828_v59  ;;  %v5877_v59 = vld [vmem:[%s7139_s3 + $0xc8] sm:$0xff]  }
 0x118   :  { %5386 = vmatpush3.bf16.msra.mxu0 %v5829_v60  ;;  %v5878_v60 = vld [vmem:[%s7139_s3 + $0x8] sm:$0xff]  }
 0x119   :  { %5387 = vmatprep.subr.bf16.mxu0 %v5831_v62  ;;  %5408 = vmatpush3.bf16.msra.mxu1 %v5830_v61  ;;  %v5879_v61 = vld [vmem:[%s7139_s3 + $0x88] sm:$0xff]   ;;  %v5880_v62 = vld [vmem:[%s7139_s3 + $0x50] sm:$0xff]  }
 0x11a   :  { %5409 = vmatprep.subr.bf16.mxu1 %v5832_v63  ;;  %v5881_v63 = vld [vmem:[%s7139_s3 + $0xd0] sm:$0xff]  }
 0x11c   :  { %5388 = vmatpush3.bf16.msra.mxu0 %v5833_v0  ;;  %v5882_v0 = vld [vmem:[%s7139_s3 + $0x10] sm:$0xff]  }
 0x11d   :  { %5389 = vmatprep.subr.bf16.mxu0 %v5835_v2  ;;  %5410 = vmatpush3.bf16.msra.mxu1 %v5834_v1  ;;  %v5883_v1 = vld [vmem:[%s7139_s3 + $0x90] sm:$0xff]   ;;  %v5884_v2 = vld [vmem:[%s7139_s3 + $0x58] sm:$0xff]  }
 0x11e   :  { %5411 = vmatprep.subr.bf16.mxu1 %v5836_v3  ;;  %v5885_v3 = vld [vmem:[%s7139_s3 + $0xd8] sm:$0xff]  }
 0x120   :  { %5390 = vmatpush3.bf16.msra.mxu0 %v5837_v4  ;;  %v5886_v4 = vld [vmem:[%s7139_s3 + $0x18] sm:$0xff]  }
 0x121   :  { %5419 = vmatprep.subr.bf16.mxu0 %v5839_v9  ;;  %5412 = vmatpush3.bf16.msra.mxu1 %v5838_v6  ;;  %v5888_v6 = vld [vmem:[%s7139_s3 + $0x60] sm:$0xff]  }
 0x122   :  { %5441 = vmatprep.subr.bf16.mxu1 %v5840_v12  ;;  %v5891_v9 = vld [vmem:[%s7139_s3 + $0xa0] sm:$0xff]   ;;  %v5894_v12 = vld [vmem:[%s7139_s3 + $0x28] sm:$0xff]  }
 0x123   :  { %2213 = vmatmul.mubr.bf16.vlgmr.msra.gmra.mrb[16].mxu0 %v658_v11  ;;  %v5893_v11 = vld [vmem:[%s7139_s3 + $0xe8] sm:$0xff]  }
 0x124   :  { %5420 = vmatpush3.bf16.msra.mxu0 %v5841_v14  ;;  %2253 = vmatmul.mubr.bf16.vlgmr.msra.gmra.mrb[16].mxu1 %v680_v18  ;;  %v5896_v14 = vld [vmem:[%s7139_s3 + $0x70] sm:$0xff]   ;;  %v5900_v18 = vld [vmem:[%s7139_s3 + $0x78] sm:$0xff]  }
 0x125   :  { %5421 = vmatprep.subr.bf16.mxu0 %v5843_v19  ;;  %5442 = vmatpush3.bf16.msra.mxu1 %v5842_v16  ;;  %v5898_v16 = vld [vmem:[%s7139_s3 + $0x30] sm:$0xff]   ;;  %v5901_v19 = vld [vmem:[%s7139_s3 + $0xf8] sm:$0xff]  }
 0x126   :  { %2292 = vmatprep.mubr.bf16.mxu0 %v679_v22  ;;  %5443 = vmatprep.subr.bf16.mxu1 %v5844_v21  ;;  %v2340_v21 = vld [vmem:[%s7161_s27] sm:$0xff] }
 0x127   :  { %2332 = vmatprep.mubr.bf16.mxu1 %v683_v25  ;;  %v2575_v22 = vrot.slane %v2340_v21, %v6513_v35  ;;  %v5903_v25 = vld [vmem:[%s7139_s3 + $0xb8] sm:$0xff]  }
 0x128   :  { %5422 = vmatpush3.bf16.msra.mxu0 %v5845_v23  ;;  %v5904_v23 = vld [vmem:[%s7139_s3 + $0x140] sm:$0xff]  }
 0x129   :  { %5423 = vmatprep.subr.bf16.mxu0 %v5847_v26  ;;  %5444 = vmatpush3.bf16.msra.mxu1 %v5846_v24  ;;  %v2568_v24 = vcombine.high %v2340_v21, %v2340_v21  ;;  %v2583_v26 = vcombine.high %v2575_v22, %v2575_v22  ;;  %v5940_v21 = vld [vmem:[%s7139_s3 + $0x280] sm:$0xff]  }
 0x12a   :  { %5445 = vmatprep.subr.bf16.mxu1 %v5848_v27  ;;  %v2591_v27 = vrot.slane %v2575_v22, %v6513_v35  ;;  %v5943_v22 = vld [vmem:[%s7139_s3 + $0x2c8] sm:$0xff]  }
 0x12c   :  { %5424 = vmatpush3.bf16.msra.mxu0 %v5849_v28  ;;  %v5906_v28 = vld [vmem:[%s7139_s3 + $0x1c0] sm:$0xff]  }
 0x12d   :  { %5425 = vmatprep.subr.bf16.mxu0 %v5851_v31  ;;  %5446 = vmatpush3.bf16.msra.mxu1 %v5850_v29  ;;  %v6665_v29 = vrot.slane %v2568_v24, %v6513_v35  ;;  %v2605_v31 = vrot.slane %v2583_v26, %v6513_v35  ;;  %v5945_v24 = vld [vmem:[%s7139_s3 + $0x250] sm:$0xff]  }
 0x12e   :  { %5447 = vmatprep.subr.bf16.mxu1 %v5852_v32  ;;  %v5905_v32 = vld [vmem:[%s7139_s3 + $0x100] sm:$0xff]   ;;  %v5947_v26 = vld [vmem:[%s7139_s3 + $0x2d0] sm:$0xff]  }
 0x130   :  { %5426 = vmatpush3.bf16.msra.mxu0 %v5853_v33  ;;  %v2584_v33 = vcombine.high %v6665_v29, %v6665_v29 }
 0x131   :  { %5427 = vmatprep.subr.bf16.mxu0 %v5855_v36  ;;  %5448 = vmatpush3.bf16.msra.mxu1 %v5854_v34  ;;  %v2613_v34 = vcombine.high %v2591_v27, %v2591_v27  ;;  %v5908_v36 = vld [vmem:[%s7139_s3 + $0x148] sm:$0xff]  }
 0x132   :  { %5449 = vmatprep.subr.bf16.mxu1 %v5856_v37  ;;  %v2615_v37 = vcombine.high %v2605_v31, %v2605_v31 }
 0x134   :  { %5428 = vmatpush3.bf16.msra.mxu0 %v5857_v38  ;;  %v5907_v38 = vld [vmem:[%s7139_s3 + $0x180] sm:$0xff]  }
 0x135   :  { %5429 = vmatprep.subr.bf16.mxu0 %v5859_v40  ;;  %5450 = vmatpush3.bf16.msra.mxu1 %v5858_v39  ;;  %v2612_v39 = vrot.slane %v2584_v33, %v6513_v35  ;;  %v5910_v40 = vld [vmem:[%s7139_s3 + $0x1c8] sm:$0xff]   ;;  %v5953_v33 = vld [vmem:[%s7139_s3 + $0x260] sm:$0xff]  }
 0x136   :  { %5451 = vmatprep.subr.bf16.mxu1 %v5860_v41  ;;  %v5909_v41 = vld [vmem:[%s7139_s3 + $0x108] sm:$0xff]  }
 0x138   :  { %5430 = vmatpush3.bf16.msra.mxu0 %v5861_v42  ;;  %v2616_v42 = vcombine.high %v2612_v39, %v2612_v39 }
 0x139   :  { %5431 = vmatprep.subr.bf16.mxu0 %v5863_v44  ;;  %5452 = vmatpush3.bf16.msra.mxu1 %v5862_v43  ;;  %v5912_v43 = vld [vmem:[%s7139_s3 + $0x150] sm:$0xff]   ;;  %v5911_v44 = vld [vmem:[%s7139_s3 + $0x188] sm:$0xff]  }
 0x13a   :  { %5453 = vmatprep.subr.bf16.mxu1 %v5864_v45  ;;  %v5914_v45 = vld [vmem:[%s7139_s3 + $0x1d0] sm:$0xff]  }
 0x13c   :  { %5432 = vmatpush3.bf16.msra.mxu0 %v5865_v46  ;;  %v5913_v46 = vld [vmem:[%s7139_s3 + $0x110] sm:$0xff]  }
 0x13d   :  { %5433 = vmatprep.subr.bf16.mxu0 %v5867_v48  ;;  %5454 = vmatpush3.bf16.msra.mxu1 %v5866_v47  ;;  %v5916_v47 = vld [vmem:[%s7139_s3 + $0x158] sm:$0xff]   ;;  %v5915_v48 = vld [vmem:[%s7139_s3 + $0x190] sm:$0xff]  }
 0x13e   :  { %5455 = vmatprep.subr.bf16.mxu1 %v5868_v49  ;;  %v5918_v49 = vld [vmem:[%s7139_s3 + $0x1d8] sm:$0xff]  }
 0x140   :  { %5434 = vmatpush3.bf16.msra.mxu0 %v5869_v50  ;;  %v5917_v50 = vld [vmem:[%s7139_s3 + $0x118] sm:$0xff]  }
 0x141   :  { %5463 = vmatprep.subr.bf16.mxu0 %v5872_v53  ;;  %5456 = vmatpush3.bf16.msra.mxu1 %v5870_v51  ;;  %v5920_v51 = vld [vmem:[%s7139_s3 + $0x160] sm:$0xff]  }
 0x142   :  { %5485 = vmatprep.subr.bf16.mxu1 %v5873_v54  ;;  %v5922_v53 = vld [vmem:[%s7139_s3 + $0x1e0] sm:$0xff]  }
 0x143   :  { %2293 = vmatmul.mubr.bf16.vlgmr.msra.gmra.mrb[20].mxu0 %v665_v52  ;;  %v5919_v52 = vld [vmem:[%s7139_s3 + $0x198] sm:$0xff]   ;;  %v5921_v54 = vld [vmem:[%s7139_s3 + $0x120] sm:$0xff]  }
 0x144   :  { %5464 = vmatpush3.bf16.msra.mxu0 %v5874_v55  ;;  %2333 = vmatmul.mubr.bf16.vlgmr.msra.gmra.mrb[20].mxu1 %v681_v57  ;;  %v5924_v55 = vld [vmem:[%s7139_s3 + $0x168] sm:$0xff]  }
 0x145   :  { %5465 = vmatprep.subr.bf16.mxu0 %v5876_v58  ;;  %5486 = vmatpush3.bf16.msra.mxu1 %v5875_v56  ;;  %v5923_v56 = vld [vmem:[%s7139_s3 + $0x1a0] sm:$0xff]   ;;  %v5926_v57 = vld [vmem:[%s7139_s3 + $0x1e8] sm:$0xff]  }
 0x146   :  { %5487 = vmatprep.subr.bf16.mxu1 %v5877_v59  ;;  %3382 = vmatprep.mubr.bf16.mxu0 %v2605_v31  ;;  %v5925_v58 = vld [vmem:[%s7139_s3 + $0x128] sm:$0xff]   ;;  %v5951_v31 = vld [vmem:[%s7139_s3 + $0x2d8] sm:$0xff]  }
 0x147   :  { %3422 = vmatprep.mubr.bf16.mxu1 %v2615_v37  ;;  %v5954_v37 = vld [vmem:[%s7139_s3 + $0x220] sm:$0xff]  }
 0x148   :  { %5466 = vmatpush3.bf16.msra.mxu0 %v5878_v60  ;;  %v5928_v60 = vld [vmem:[%s7139_s3 + $0x170] sm:$0xff]  }
 0x149   :  { %5467 = vmatprep.subr.bf16.mxu0 %v5880_v62  ;;  %5488 = vmatpush3.bf16.msra.mxu1 %v5879_v61  ;;  %v5927_v62 = vld [vmem:[%s7139_s3 + $0x1a8] sm:$0xff]  }
 0x14a   :  { %5489 = vmatprep.subr.bf16.mxu1 %v5881_v63 }
 0x14c   :  { %5468 = vmatpush3.bf16.msra.mxu0 %v5882_v0 }
 0x14d   :  { %5469 = vmatprep.subr.bf16.mxu0 %v5884_v2  ;;  %5490 = vmatpush3.bf16.msra.mxu1 %v5883_v1  ;;  %v5929_v2 = vld [vmem:[%s7139_s3 + $0x130] sm:$0xff]  }
 0x14e   :  { %5491 = vmatprep.subr.bf16.mxu1 %v5885_v3  ;;  %v5930_v3 = vld [vmem:[%s7139_s3 + $0x1f0] sm:$0xff]  }
 0x150   :  { %5470 = vmatpush3.bf16.msra.mxu0 %v5886_v4 }
 0x151   :  { %5471 = vmatprep.subr.bf16.mxu0 %v5888_v6  ;;  %5492 = vmatpush3.bf16.msra.mxu1 %v5887_v5 }
 0x152   :  { %5493 = vmatprep.subr.bf16.mxu1 %v5889_v7  ;;  %v5932_v7 = vld [vmem:[%s7139_s3 + $0x178] sm:$0xff]  }
 0x154   :  { %5472 = vmatpush3.bf16.msra.mxu0 %v5890_v8 }
 0x155   :  { %5473 = vmatprep.subr.bf16.mxu0 %v5892_v10  ;;  %5494 = vmatpush3.bf16.msra.mxu1 %v5891_v9  ;;  %v5931_v9 = vld [vmem:[%s7139_s3 + $0x1b0] sm:$0xff]  }
 0x156   :  { %5495 = vmatprep.subr.bf16.mxu1 %v5893_v11 }
 0x158   :  { %5474 = vmatpush3.bf16.msra.mxu0 %v5894_v12  ;;  %v5934_v12 = vld [vmem:[%s7139_s3 + $0x1f8] sm:$0xff]  }
 0x159   :  { %5475 = vmatprep.subr.bf16.mxu0 %v5896_v14  ;;  %5496 = vmatpush3.bf16.msra.mxu1 %v5895_v13  ;;  %v5933_v13 = vld [vmem:[%s7139_s3 + $0x138] sm:$0xff]   ;;  %v2598_v14 = vrot.slane %v6665_v29, %v6513_v35  ;;  %v5948_v29 = vld [vmem:[%s7139_s3 + $0x290] sm:$0xff]  }
 0x15a   :  { %5497 = vmatprep.subr.bf16.mxu1 %v5897_v15  ;;  %v5937_v15 = vld [vmem:[%s7139_s3 + $0x240] sm:$0xff]  }
 0x15c   :  { %5476 = vmatpush3.bf16.msra.mxu0 %v5898_v16  ;;  %v5936_v16 = vld [vmem:[%s7139_s3 + $0x1b8] sm:$0xff]  }
 0x15d   :  { %5477 = vmatprep.subr.bf16.mxu0 %v5900_v18  ;;  %5498 = vmatpush3.bf16.msra.mxu1 %v5899_v17  ;;  %v5939_v17 = vld [vmem:[%s7139_s3 + $0x2c0] sm:$0xff]  }
 0x15e   :  { %5499 = vmatprep.subr.bf16.mxu1 %v5901_v19  ;;  %v5938_v18 = vld [vmem:[%s7139_s3 + $0x200] sm:$0xff]   ;;  %v2614_v19 = vcombine.high %v2598_v14, %v2598_v14 }
 0x160   :  { %5478 = vmatpush3.bf16.msra.mxu0 %v5902_v20  ;;  %v5941_v20 = vld [vmem:[%s7139_s3 + $0x248] sm:$0xff]  }
 0x161   :  { %5507 = vmatprep.subr.bf16.mxu0 %v5904_v23  ;;  %5500 = vmatpush3.bf16.msra.mxu1 %v5903_v25  ;;  %v5942_v23 = vld [vmem:[%s7139_s3 + $0x208] sm:$0xff]  }
 0x162   :  { %5529 = vmatprep.subr.bf16.mxu1 %v5906_v28  ;;  %v5944_v25 = vld [vmem:[%s7139_s3 + $0x288] sm:$0xff]   ;;  %v5949_v28 = vld [vmem:[%s7139_s3 + $0x258] sm:$0xff]  }
 0x163   :  { %3383 = vmatmul.mubr.bf16.vlgmr.msra.gmra.mrb[24].mxu0 %v2591_v27  ;;  %v5946_v27 = vld [vmem:[%s7139_s3 + $0x210] sm:$0xff]  }
 0x164   :  { %5508 = vmatpush3.bf16.msra.mxu0 %v5905_v32  ;;  %3423 = vmatmul.mubr.bf16.vlgmr.msra.gmra.mrb[24].mxu1 %v2613_v34  ;;  %v5950_v32 = vld [vmem:[%s7139_s3 + $0x218] sm:$0xff]  }
 0x165   :  { %5509 = vmatprep.subr.bf16.mxu0 %v5908_v36  ;;  %5530 = vmatpush3.bf16.msra.mxu1 %v5907_v38  ;;  %v5952_v34 = vld [vmem:[%s7139_s3 + $0x298] sm:$0xff]   ;;  %v5955_v36 = vld [vmem:[%s7139_s3 + $0x2e0] sm:$0xff]   ;;  %v5957_v38 = vld [vmem:[%s7139_s3 + $0x268] sm:$0xff]  }
 0x166   :  { %3462 = vmatprep.mubr.bf16.mxu0 %v2612_v39  ;;  %5531 = vmatprep.subr.bf16.mxu1 %v5910_v40  ;;  %v5956_v39 = vld [vmem:[%s7139_s3 + $0x2a0] sm:$0xff]   ;;  %v5959_v40 = vld [vmem:[%s7139_s3 + $0x2e8] sm:$0xff]  }
 0x167   :  { %3502 = vmatprep.mubr.bf16.mxu1 %v2616_v42 }
 0x168   :  { %5510 = vmatpush3.bf16.msra.mxu0 %v5909_v41  ;;  %v5958_v41 = vld [vmem:[%s7139_s3 + $0x228] sm:$0xff]  }
 0x169   :  { %5511 = vmatprep.subr.bf16.mxu0 %v5912_v43  ;;  %5532 = vmatpush3.bf16.msra.mxu1 %v5911_v44  ;;  %v5961_v43 = vld [vmem:[%s7139_s3 + $0x270] sm:$0xff]  }
 0x16a   :  { %5533 = vmatprep.subr.bf16.mxu1 %v5914_v45  ;;  %v5960_v45 = vld [vmem:[%s7139_s3 + $0x2a8] sm:$0xff]  }
 0x16c   :  { %5512 = vmatpush3.bf16.msra.mxu0 %v5913_v46 }
 0x16d   :  { %5513 = vmatprep.subr.bf16.mxu0 %v5916_v47  ;;  %5534 = vmatpush3.bf16.msra.mxu1 %v5915_v48 }
 0x16e   :  { %5535 = vmatprep.subr.bf16.mxu1 %v5918_v49  ;;  %v5962_v49 = vld [vmem:[%s7139_s3 + $0x230] sm:$0xff]  }
 0x170   :  { %5514 = vmatpush3.bf16.msra.mxu0 %v5917_v50  ;;  %v5963_v50 = vld [vmem:[%s7139_s3 + $0x2f0] sm:$0xff]  }
 0x171   :  { %5515 = vmatprep.subr.bf16.mxu0 %v5920_v51  ;;  %5536 = vmatpush3.bf16.msra.mxu1 %v5919_v52 }
 0x172   :  { %5537 = vmatprep.subr.bf16.mxu1 %v5922_v53  ;;  %v5964_v53 = vld [vmem:[%s7139_s3 + $0x2b0] sm:$0xff]  }
 0x174   :  { %5516 = vmatpush3.bf16.msra.mxu0 %v5921_v54 }
 0x175   :  { %5517 = vmatprep.subr.bf16.mxu0 %v5924_v55  ;;  %5538 = vmatpush3.bf16.msra.mxu1 %v5923_v56  ;;  %v5965_v56 = vld [vmem:[%s7139_s3 + $0x278] sm:$0xff]  }
 0x176   :  { %v5215_v59 = vpop.f32.mrb[0].mxu0  ;;  %5539 = vmatprep.subr.bf16.mxu1 %v5926_v57 }
 0x177   :  { %v5216_v61 = vpop.f32.mrb[1].mxu0  ;;  %v5237_v63 = vpop.f32.mrb[0].mxu1 }
 0x178   :  { %v5217_v0 = vadd.f32 %v5216_v61, %v5215_v59  ;;  %v5218_v1 = vpop.f32.mrb[2].mxu0  ;;  %v5238_v4 = vpop.f32.mrb[1].mxu1  ;;  %5518 = vmatpush3.bf16.msra.mxu0 %v5925_v58  ;;  %v5967_v58 = vld [vmem:[%s7139_s3 + $0x2f8] sm:$0xff]   ;;  %v2341_v61 = vld [vmem:[%s7161_s27 + $0x8] sm:$0x3f] }
 0x179   :  { %v5219_v5 = vpop.f32.mrb[3].mxu0  ;;  %v5239_v6 = vadd.f32 %v5238_v4, %v5237_v63  ;;  %5519 = vmatprep.subr.bf16.mxu0 %v5928_v60  ;;  %v5240_v8 = vpop.f32.mrb[2].mxu1  ;;  %5540 = vmatpush3.bf16.msra.mxu1 %v5927_v62  ;;  %v5966_v62 = vld [vmem:[%s7139_s3 + $0x238] sm:$0xff]   ;;  %v2624_v63 = vrot.slane %v2341_v61, %v6513_v35  ;;  %v5969_v1 = vld [vmem:[%s7139_s3 + $0x340] sm:$0xff]  }
 0x17a   :  { %v5241_v10 = vpop.f32.mrb[3].mxu1  ;;  %5541 = vmatprep.subr.bf16.mxu1 %v5930_v3  ;;  %v5968_v3 = vld [vmem:[%s7139_s3 + $0x2b8] sm:$0xff]  }
 0x17b   :  { %v6752_v11 = vadd.f32 %v5239_v6, %v5217_v0  ;;  %v2617_v0 = vcombine.high %v2341_v61, %v2341_v61  ;;  %v2640_v4 = vrot.slane %v2624_v63, %v6513_v35  ;;  %v5971_v10 = vld [vmem:[%s7139_s3 + $0x348] sm:$0xff]  }
 0x17c   :  { %5520 = vmatpush3.bf16.msra.mxu0 %v5929_v2  ;;  %v2632_v2 = vcombine.high %v2624_v63, %v2624_v63 }
 0x17d   :  { %5521 = vmatprep.subr.bf16.mxu0 %v5932_v7  ;;  %5542 = vmatpush3.bf16.msra.mxu1 %v5931_v9  ;;  %v2631_v5 = vrot.slane %v2617_v0, %v6513_v35  ;;  %v5970_v7 = vld [vmem:[%s7139_s3 + $0x300] sm:$0xff]   ;;  %v2662_v9 = vcombine.high %v2640_v4, %v2640_v4 }
 0x17e   :  { %5543 = vmatprep.subr.bf16.mxu1 %v5934_v12  ;;  %v2654_v6 = vrot.slane %v2632_v2, %v6513_v35  ;;  %v5986_v0 = vld [vmem:[#allocation5] ss:$8 sps:$4 sm:$0xff]   ;;  %v5991_v2 = vld [vmem:[#allocation5 + $0x14] ss:$8 sps:$4 sm:$0xff]  }
 0x17f   :  { %v2633_v8 = vcombine.high %v2631_v5, %v2631_v5 }
 0x180   :  { %5522 = vmatpush3.bf16.msra.mxu0 %v5933_v13  ;;  %v5972_v13 = vld [vmem:[%s7139_s3 + $0x308] sm:$0xff]  }
 0x181   :  { %5551 = vmatprep.subr.bf16.mxu0 %v5937_v15  ;;  %5544 = vmatpush3.bf16.msra.mxu1 %v5936_v16  ;;  %v2661_v12 = vrot.slane %v2633_v8, %v6513_v35  ;;  %v5974_v15 = vld [vmem:[%s7139_s3 + $0x310] sm:$0xff]   ;;  %v5975_v16 = vld [vmem:[%s7139_s3 + $0x358] sm:$0xff]   ;;  %v6000_v8 = vld [vmem:[#allocation5 + $0x44] ss:$8 sps:$4 sm:$0xff]  }
 0x182   :  { %5573 = vmatprep.subr.bf16.mxu1 %v5939_v17  ;;  %v5976_v17 = vld [vmem:[%s7139_s3 + $0x318] sm:$0xff]  }
 0x183   :  { %3463 = vmatmul.mubr.bf16.vlgmr.msra.gmra.mrb[28].mxu0 %v2598_v14  ;;  %v5973_v14 = vld [vmem:[%s7139_s3 + $0x350] sm:$0xff]  }
 0x184   :  { %5552 = vmatpush3.bf16.msra.mxu0 %v5938_v18  ;;  %3503 = vmatmul.mubr.bf16.vlgmr.msra.gmra.mrb[28].mxu1 %v2614_v19  ;;  %v5977_v18 = vld [vmem:[%s7139_s3 + $0x360] sm:$0xff]  }
 0x185   :  { %5553 = vmatprep.subr.bf16.mxu0 %v5941_v20  ;;  %5574 = vmatpush3.bf16.msra.mxu1 %v5940_v21  ;;  %v5978_v19 = vld [vmem:[%s7139_s3 + $0x320] sm:$0xff]   ;;  %v5979_v20 = vld [vmem:[%s7139_s3 + $0x368] sm:$0xff]  }
 0x186   :  { %5575 = vmatprep.subr.bf16.mxu1 %v5943_v22  ;;  %3542 = vmatprep.mubr.bf16.mxu0 %v2654_v6  ;;  %v5980_v21 = vld [vmem:[%s7139_s3 + $0x328] sm:$0xff]   ;;  %v5981_v22 = vld [vmem:[%s7139_s3 + $0x370] sm:$0xff]  }
 0x188   :  { %5554 = vmatpush3.bf16.msra.mxu0 %v5942_v23 }
 0x189   :  { %5555 = vmatprep.subr.bf16.mxu0 %v5945_v24  ;;  %5576 = vmatpush3.bf16.msra.mxu1 %v5944_v25  ;;  %v5982_v25 = vld [vmem:[%s7139_s3 + $0x330] sm:$0xff]  }
 0x18a   :  { %5577 = vmatprep.subr.bf16.mxu1 %v5947_v26 }
 0x18c   :  { %5556 = vmatpush3.bf16.msra.mxu0 %v5946_v27 }
 0x18d   :  { %5557 = vmatprep.subr.bf16.mxu0 %v5949_v28  ;;  %5578 = vmatpush3.bf16.msra.mxu1 %v5948_v29  ;;  %v5983_v29 = vld [vmem:[%s7139_s3 + $0x378] sm:$0xff]  }
 0x18e   :  { %5579 = vmatprep.subr.bf16.mxu1 %v5951_v31 }
 0x190   :  { %5558 = vmatpush3.bf16.msra.mxu0 %v5950_v32 }
 0x191   :  { %5559 = vmatprep.subr.bf16.mxu0 %v5953_v33  ;;  %5580 = vmatpush3.bf16.msra.mxu1 %v5952_v34 }
 0x192   :  { %5581 = vmatprep.subr.bf16.mxu1 %v5955_v36 }
 0x194   :  { %5560 = vmatpush3.bf16.msra.mxu0 %v5954_v37  ;;  %v5984_v37 = vld [vmem:[%s7139_s3 + $0x338] sm:$0xff]  }
 0x195   :  { %5561 = vmatprep.subr.bf16.mxu0 %v5957_v38  ;;  %5582 = vmatpush3.bf16.msra.mxu1 %v5956_v39 }
 0x196   :  { %v5259_v42 = vpop.f32.mrb[4].mxu0  ;;  %5583 = vmatprep.subr.bf16.mxu1 %v5959_v40  ;;  %v2647_v40 = vrot.slane %v2631_v5, %v6513_v35  ;;  %v5992_v5 = vld [vmem:[#allocation5 + $0x20] ss:$8 sps:$4 sm:$0xff]  }
 0x197   :  { %v5260_v44 = vpop.f32.mrb[5].mxu0  ;;  %v5281_v48 = vpop.f32.mrb[4].mxu1 }
 0x198   :  { %v5261_v46 = vadd.f32 %v5260_v44, %v5259_v42  ;;  %v5262_v47 = vpop.f32.mrb[6].mxu0  ;;  %5562 = vmatpush3.bf16.msra.mxu0 %v5958_v41  ;;  %v5282_v52 = vpop.f32.mrb[5].mxu1 }
 0x199   :  { %v5263_v51 = vpop.f32.mrb[7].mxu0  ;;  %v5283_v55 = vadd.f32 %v5282_v52, %v5281_v48  ;;  %5563 = vmatprep.subr.bf16.mxu0 %v5961_v43  ;;  %v5284_v57 = vpop.f32.mrb[6].mxu1  ;;  %5584 = vmatpush3.bf16.msra.mxu1 %v5960_v45 }
 0x19a   :  { %v1975_v54 = vadd.f32 %v5261_v46, %v6752_v11  ;;  %v5285_v59 = vpop.f32.mrb[7].mxu1  ;;  %5585 = vmatprep.subr.bf16.mxu1 %v5963_v50  ;;  %v2663_v11 = vcombine.high %v2654_v6, %v2654_v6  ;;  %v5997_v6 = vld [vmem:[#allocation5 + $0x34] ss:$8 sps:$4 sm:$0xff]  }
 0x19c   :  { %v2015_v60 = vadd.f32 %v5283_v55, %v1975_v54  ;;  %5564 = vmatpush3.bf16.msra.mxu0 %v5962_v49  ;;  %3582 = vmatprep.mubr.bf16.mxu1 %v2663_v11  ;;  %v6001_v11 = vld [vmem:[#allocation5 + $0x50] ss:$8 sps:$4 sm:$0xff]  }
 0x19d   :  { %5565 = vmatprep.subr.bf16.mxu0 %v5965_v56  ;;  %5586 = vmatpush3.bf16.msra.mxu1 %v5964_v53 }
 0x19e   :  { %5587 = vmatprep.subr.bf16.mxu1 %v5967_v58 }
 0x1a0   :  { %5566 = vmatpush3.bf16.msra.mxu0 %v5966_v62 }
 0x1a1   :  { %5595 = vmatprep.subr.bf16.mxu0 %v5969_v1  ;;  %5588 = vmatpush3.bf16.msra.mxu1 %v5968_v3  ;;  %v5988_v1 = vld [vmem:[#allocation5 + $0x4] ss:$8 sps:$4 sm:$0xff]   ;;  %v5989_v3 = vld [vmem:[#allocation5 + $0x10] ss:$8 sps:$4 sm:$0xff]  }
 0x1a2   :  { %3732 = vmatprep.subr.bf16.mxu1 %v5988_v1 }
 0x1a3   :  { %3543 = vmatmul.mubr.bf16.vlgmr.msra.gmra.mrb[32].mxu0 %v2640_v4  ;;  %v5994_v4 = vld [vmem:[#allocation5 + $0x24] ss:$8 sps:$4 sm:$0xff]  }
 0x1a4   :  { %5596 = vmatpush3.bf16.msra.mxu0 %v5970_v7  ;;  %3583 = vmatmul.mubr.bf16.vlgmr.msra.gmra.mrb[32].mxu1 %v2662_v9  ;;  %v5995_v7 = vld [vmem:[#allocation5 + $0x30] ss:$8 sps:$4 sm:$0xff]   ;;  %v5998_v9 = vld [vmem:[#allocation5 + $0x40] ss:$8 sps:$4 sm:$0xff]  }
 0x1a5   :  { %5597 = vmatprep.subr.bf16.mxu0 %v5971_v10  ;;  %3622 = vmatprep.mubr.bf16.mxu0 %v2661_v12  ;;  %v6003_v10 = vld [vmem:[#allocation5 + $0x54] ss:$8 sps:$4 sm:$0xff]  }
 0x1a6   :  { %3733 = vmatpush1.bf16.msra.mxu1 %v5986_v0 }
 0x1a7   :  { %3734 = vmatprep.subr.bf16.mxu1 %v5991_v2 }
 0x1a8   :  { %5598 = vmatpush3.bf16.msra.mxu0 %v5972_v13 }
 0x1a9   :  { %5599 = vmatprep.subr.bf16.mxu0 %v5973_v14 }
 0x1aa   :  { %3735 = vmatpush1.bf16.msra.mxu1 %v5989_v3 }
 0x1ab   :  { %3736 = vmatprep.subr.bf16.mxu1 %v5994_v4 }
 0x1ac   :  { %5600 = vmatpush3.bf16.msra.mxu0 %v5974_v15 }
 0x1ad   :  { %5601 = vmatprep.subr.bf16.mxu0 %v5975_v16 }
 0x1ae   :  { %3737 = vmatpush1.bf16.msra.mxu1 %v5992_v5 }
 0x1af   :  { %3738 = vmatprep.subr.bf16.mxu1 %v5997_v6 }
 0x1b0   :  { %5602 = vmatpush3.bf16.msra.mxu0 %v5976_v17 }
 0x1b1   :  { %5603 = vmatprep.subr.bf16.mxu0 %v5977_v18 }
 0x1b2   :  { %3739 = vmatpush1.bf16.msra.mxu1 %v5995_v7 }
 0x1b3   :  { %3740 = vmatprep.subr.bf16.mxu1 %v6000_v8 }
 0x1b4   :  { %5604 = vmatpush3.bf16.msra.mxu0 %v5978_v19 }
 0x1b5   :  { %5605 = vmatprep.subr.bf16.mxu0 %v5979_v20 }
 0x1b6   :  { %v5303_v23 = vpop.f32.mrb[8].mxu0  ;;  %3741 = vmatpush1.bf16.msra.mxu1 %v5998_v9 }
 0x1b7   :  { %v5304_v24 = vpop.f32.mrb[9].mxu0  ;;  %v5325_v28 = vpop.f32.mrb[8].mxu1  ;;  %3742 = vmatprep.subr.bf16.mxu1 %v6003_v10 }
 0x1b8   :  { %v5305_v26 = vadd.f32 %v5304_v24, %v5303_v23  ;;  %v5306_v27 = vpop.f32.mrb[10].mxu0  ;;  %5606 = vmatpush3.bf16.msra.mxu0 %v5980_v21  ;;  %v5326_v32 = vpop.f32.mrb[9].mxu1  ;;  %v6004_v24 = vld [vmem:[#allocation5 + $0x60] ss:$8 sps:$4 sm:$0xff]  }
 0x1b9   :  { %v5307_v31 = vpop.f32.mrb[11].mxu0  ;;  %v5327_v34 = vadd.f32 %v5326_v32, %v5325_v28  ;;  %5607 = vmatprep.subr.bf16.mxu0 %v5981_v22  ;;  %v5328_v36 = vpop.f32.mrb[10].mxu1  ;;  %v6006_v22 = vld [vmem:[#allocation5 + $0x64] ss:$8 sps:$4 sm:$0xff]   ;;  %v6007_v27 = vld [vmem:[#allocation5 + $0x70] ss:$8 sps:$4 sm:$0xff]  }
 0x1ba   :  { %v2055_v33 = vadd.f32 %v5305_v26, %v2015_v60  ;;  %v5329_v38 = vpop.f32.mrb[11].mxu1  ;;  %3743 = vmatpush1.bf16.msra.mxu1 %v6001_v11  ;;  %v6009_v26 = vld [vmem:[#allocation5 + $0x74] ss:$8 sps:$4 sm:$0xff]   ;;  %v6318_v28 = vmov 0   ;;  %v6012_v31 = vld [vmem:[%s7143_s7 + $0x4] ss:$8 sps:$4 sm:$0xff]  }
 0x1bb   :  { %3744 = vmatprep.subr.bf16.mxu1 %v6006_v22  ;;  %3764 = vmatprep.mubr.bf16.mxu1 %v6318_v28  ;;  %v6030_v22 = vld [vmem:[%s7143_s7 + $0x64] ss:$8 sps:$4 sm:$0xff]  }
 0x1bc   :  { %v2095_v39 = vadd.f32 %v5327_v34, %v2055_v33  ;;  %5608 = vmatpush3.bf16.msra.mxu0 %v5982_v25 }
 0x1bd   :  { %5609 = vmatprep.subr.bf16.mxu0 %v5983_v29  ;;  %v6010_v29 = vld [vmem:[%s7143_s7] ss:$8 sps:$4 sm:$0xff]  }
 0x1be   :  { %3745 = vmatpush1.bf16.msra.mxu1 %v6004_v24  ;;  %v6033_v24 = vld [vmem:[%s7143_s7 + $0x74] ss:$8 sps:$4 sm:$0xff]  }
 0x1bf   :  { %3746 = vmatprep.subr.bf16.mxu1 %v6009_v26  ;;  %v6036_v26 = vld [vmem:[%s7143_s7 + $0x84] ss:$8 sps:$4 sm:$0xff]  }
 0x1c0   :  { %5610 = vmatpush3.bf16.msra.mxu0 %v5984_v37 }
 0x1c1   :  { %4041 = vmatprep.subr.bf16.mxu0 %v6012_v31  ;;  %v6037_v31 = vld [vmem:[%s7143_s7 + $0x90] ss:$8 sps:$4 sm:$0xff]  }
 0x1c2   :  { %3747 = vmatpush1.bf16.msra.mxu1 %v6007_v27  ;;  %v6034_v27 = vld [vmem:[%s7143_s7 + $0x80] ss:$8 sps:$4 sm:$0xff]  }
 0x1c3   :  { %3623 = vmatmul.mubr.bf16.vlgmr.msra.gmra.mrb[36].mxu0 %v2647_v40 }
 0x1c4   :  { %4042 = vmatpush1.bf16.msra.mxu0 %v6010_v29  ;;  %v6039_v29 = vld [vmem:[%s7143_s7 + $0x94] ss:$8 sps:$4 sm:$0xff]  }
 0x1d6   :  { %v5347_v41 = vpop.f32.mrb[12].mxu0 }
 0x1d7   :  { %v5348_v42 = vpop.f32.mrb[13].mxu0  ;;  %v5369_v45 = vpop.f32.mrb[12].mxu1 }
 0x1d8   :  { %v5349_v43 = vadd.f32 %v5348_v42, %v5347_v41  ;;  %v5350_v44 = vpop.f32.mrb[14].mxu0  ;;  %v5370_v47 = vpop.f32.mrb[13].mxu1 }
 0x1d9   :  { %v5351_v46 = vpop.f32.mrb[15].mxu0  ;;  %v5371_v49 = vadd.f32 %v5370_v47, %v5369_v45  ;;  %v5372_v50 = vpop.f32.mrb[14].mxu1 }
 0x1da   :  { %v2135_v48 = vadd.f32 %v5349_v43, %v2095_v39  ;;  %v5373_v51 = vpop.f32.mrb[15].mxu1 }
 0x1dc   :  { %v2175_v52 = vadd.f32 %v5371_v49, %v2135_v48 }
 0x1f6   :  { %v5391_v53 = vpop.f32.mrb[16].mxu0 }
 0x1f7   :  { %v5392_v54 = vpop.f32.mrb[17].mxu0  ;;  %v5413_v57 = vpop.f32.mrb[16].mxu1 }
 0x1f8   :  { %v5393_v55 = vadd.f32 %v5392_v54, %v5391_v53  ;;  %v5394_v56 = vpop.f32.mrb[18].mxu0  ;;  %v5414_v58 = vpop.f32.mrb[17].mxu1 }
 0x1f9   :  { %v5395_v35 = vpop.f32.mrb[19].mxu0  ;;  %v5415_v60 = vadd.f32 %v5414_v58, %v5413_v57  ;;  %v5416_v61 = vpop.f32.mrb[18].mxu1 }
 0x1fa   :  { %v2215_v59 = vadd.f32 %v5393_v55, %v2175_v52  ;;  %v5417_v62 = vpop.f32.mrb[19].mxu1 }
 0x1fc   :  { %v2255_v63 = vadd.f32 %v5415_v60, %v2215_v59 }
 0x216   :  { %v5435_v12 = vpop.f32.mrb[20].mxu0 }
 0x217   :  { %v5436_v13 = vpop.f32.mrb[21].mxu0  ;;  %v5457_v16 = vpop.f32.mrb[20].mxu1 }
 0x218   :  { %v5437_v14 = vadd.f32 %v5436_v13, %v5435_v12  ;;  %v5438_v15 = vpop.f32.mrb[22].mxu0  ;;  %v5458_v18 = vpop.f32.mrb[21].mxu1  ;;  %v6013_v12 = vld [vmem:[%s7143_s7 + $0x10] ss:$8 sps:$4 sm:$0xff]   ;;  %v6015_v13 = vld [vmem:[%s7143_s7 + $0x14] ss:$8 sps:$4 sm:$0xff]  }
 0x219   :  { %v5439_v17 = vpop.f32.mrb[23].mxu0  ;;  %v5459_v20 = vadd.f32 %v5458_v18, %v5457_v16  ;;  %v5460_v21 = vpop.f32.mrb[22].mxu1  ;;  %4043 = vmatprep.subr.bf16.mxu0 %v6015_v13  ;;  %v6016_v15 = vld [vmem:[%s7143_s7 + $0x20] ss:$8 sps:$4 sm:$0xff]   ;;  %v6021_v16 = vld [vmem:[%s7143_s7 + $0x34] ss:$8 sps:$4 sm:$0xff]  }
 0x21a   :  { %v2295_v19 = vadd.f32 %v5437_v14, %v2255_v63  ;;  %v5461_v23 = vpop.f32.mrb[23].mxu1  ;;  %4044 = vmatpush1.bf16.msra.mxu0 %v6013_v12  ;;  %v6018_v14 = vld [vmem:[%s7143_s7 + $0x24] ss:$8 sps:$4 sm:$0xff]   ;;  %v6019_v17 = vld [vmem:[%s7143_s7 + $0x30] ss:$8 sps:$4 sm:$0xff]  }
 0x21b   :  { %4045 = vmatprep.subr.bf16.mxu0 %v6018_v14  ;;  %v6024_v18 = vld [vmem:[%s7143_s7 + $0x44] ss:$8 sps:$4 sm:$0xff]   ;;  %v6025_v21 = vld [vmem:[%s7143_s7 + $0x50] ss:$8 sps:$4 sm:$0xff]   ;;  %v6028_v23 = vld [vmem:[%s7143_s7 + $0x60] ss:$8 sps:$4 sm:$0xff]  }
 0x21c   :  { %v2335_v25 = vadd.f32 %v5459_v20, %v2295_v19  ;;  %v6022_v19 = vld [vmem:[%s7143_s7 + $0x40] ss:$8 sps:$4 sm:$0xff]   ;;  %v6027_v20 = vld [vmem:[%s7143_s7 + $0x54] ss:$8 sps:$4 sm:$0xff]  }
 0x21e   :  { %4046 = vmatpush1.bf16.msra.mxu0 %v6016_v15 }
 0x21f   :  { %4047 = vmatprep.subr.bf16.mxu0 %v6021_v16 }
 0x222   :  { %4048 = vmatpush1.bf16.msra.mxu0 %v6019_v17 }
 0x223   :  { %4049 = vmatprep.subr.bf16.mxu0 %v6024_v18 }
 0x226   :  { %4050 = vmatpush1.bf16.msra.mxu0 %v6022_v19 }
 0x227   :  { %4051 = vmatprep.subr.bf16.mxu0 %v6027_v20 }
 0x22a   :  { %4052 = vmatpush1.bf16.msra.mxu0 %v6025_v21 }
 0x22b   :  { %4053 = vmatprep.subr.bf16.mxu0 %v6030_v22  ;;  %v7021_v22 = vsub.s32 0, %v6510_v30 }
 0x22e   :  { %4054 = vmatpush1.bf16.msra.mxu0 %v6028_v23  ;;  %v3773_v23 = vld [vmem:[%s7141_s5] sm:$0x3] }
 0x22f   :  { %4055 = vmatprep.subr.bf16.mxu0 %v6033_v24  ;;  %v7027_v24 = vsub.s32 1, %v6510_v30 }
 0x236   :  { %v5479_v32 = vpop.f32.mrb[24].mxu0 }
 0x237   :  { %v5480_v33 = vpop.f32.mrb[25].mxu0  ;;  %v5501_v34 = vpop.f32.mrb[24].mxu1 }
 0x238   :  { %v5481_v36 = vadd.f32 %v5480_v33, %v5479_v32  ;;  %v5482_v37 = vpop.f32.mrb[26].mxu0  ;;  %v5502_v38 = vpop.f32.mrb[25].mxu1  ;;  %v6042_v32 = vld [vmem:[%s7143_s7 + $0xa4] ss:$8 sps:$4 sm:$0xff]   ;;  %v6040_v33 = vld [vmem:[%s7143_s7 + $0xa0] ss:$8 sps:$4 sm:$0xff]  }
 0x239   :  { %v5483_v39 = vpop.f32.mrb[27].mxu0  ;;  %v5503_v40 = vadd.f32 %v5502_v38, %v5501_v34  ;;  %v5504_v41 = vpop.f32.mrb[26].mxu1  ;;  %v6045_v34 = vld [vmem:[%s7143_s7 + $0xb4] ss:$8 sps:$4 sm:$0xff]   ;;  %v6048_v37 = vld [vmem:[%s7143_s7 + $0xc4] ss:$8 sps:$4 sm:$0xff]  }
 0x23a   :  { %v5505_v42 = vpop.f32.mrb[27].mxu1  ;;  %v6046_v38 = vld [vmem:[%s7143_s7 + $0xc0] ss:$8 sps:$4 sm:$0xff]   ;;  %v6051_v39 = vld [vmem:[%s7143_s7 + $0xd4] ss:$8 sps:$4 sm:$0xff]  }
 0x23b   :  { %v3425_v43 = vadd.f32 %v5503_v40, %v5481_v36  ;;  %v6043_v36 = vld [vmem:[%s7143_s7 + $0xb0] ss:$8 sps:$4 sm:$0xff]   ;;  %v6052_v41 = vld [vmem:[%s7143_s7 + $0xe0] ss:$8 sps:$4 sm:$0xff]   ;;  %v6054_v42 = vld [vmem:[%s7143_s7 + $0xe4] ss:$8 sps:$4 sm:$0xff]  }
 0x23c   :  { %v6049_v40 = vld [vmem:[%s7143_s7 + $0xd0] ss:$8 sps:$4 sm:$0xff]  }
 0x256   :  { %v5523_v44 = vpop.f32.mrb[28].mxu0 }
 0x257   :  { %v5524_v45 = vpop.f32.mrb[29].mxu0  ;;  %v5545_v48 = vpop.f32.mrb[28].mxu1 }
 0x258   :  { %v5525_v46 = vadd.f32 %v5524_v45, %v5523_v44  ;;  %v5526_v47 = vpop.f32.mrb[30].mxu0  ;;  %v5546_v50 = vpop.f32.mrb[29].mxu1  ;;  %v6055_v44 = vld [vmem:[%s7143_s7 + $0xf0] ss:$8 sps:$4 sm:$0xff]  }
 0x259   :  { %v5527_v49 = vpop.f32.mrb[31].mxu0  ;;  %v5547_v52 = vadd.f32 %v5546_v50, %v5545_v48  ;;  %v5548_v53 = vpop.f32.mrb[30].mxu1 }
 0x25a   :  { %v3465_v51 = vadd.f32 %v5525_v46, %v3425_v43  ;;  %v5549_v54 = vpop.f32.mrb[31].mxu1  ;;  %v6057_v43 = vld [vmem:[%s7143_s7 + $0xf4] ss:$8 sps:$4 sm:$0xff]  }
 0x25c   :  { %v3505_v55 = vadd.f32 %v5547_v52, %v3465_v51 }
 0x276   :  { %v5567_v56 = vpop.f32.mrb[32].mxu0 }
 0x277   :  { %v5568_v57 = vpop.f32.mrb[33].mxu0  ;;  %v5589_v59 = vpop.f32.mrb[32].mxu1 }
 0x278   :  { %v5569_v35 = vadd.f32 %v5568_v57, %v5567_v56  ;;  %v5570_v58 = vpop.f32.mrb[34].mxu0  ;;  %v5590_v61 = vpop.f32.mrb[33].mxu1 }
 0x279   :  { %v5571_v60 = vpop.f32.mrb[35].mxu0  ;;  %v5591_v63 = vadd.f32 %v5590_v61, %v5589_v59  ;;  %v5592_v0 = vpop.f32.mrb[34].mxu1 }
 0x27a   :  { %v3545_v62 = vadd.f32 %v5569_v35, %v3505_v55  ;;  %v5593_v1 = vpop.f32.mrb[35].mxu1 }
 0x27c   :  { %v3585_v2 = vadd.f32 %v5591_v63, %v3545_v62 }
 0x296   :  { %v5611_v3 = vpop.f32.mrb[36].mxu0 }
 0x297   :  { %v5612_v4 = vpop.f32.mrb[37].mxu0 }
 0x298   :  { %v5613_v5 = vadd.f32 %v5612_v4, %v5611_v3  ;;  %v5614_v6 = vpop.f32.mrb[38].mxu0 }
 0x299   :  { %v5615_v7 = vpop.f32.mrb[39].mxu0 }
 0x29a   :  { %v3625_v8 = vadd.f32 %v5613_v5, %v3585_v2 }
 0x29c   :  { %v3631_v9 = vrot.slane %v3625_v8, 6 }
 0x29e   :  { %v3634_v10 = vsel %vm3633_vm0, %v2335_v25, %v3631_v9  ;;  %v6031_v25 = vld [vmem:[%s7143_s7 + $0x70] ss:$8 sps:$4 sm:$0xff]  }
 0x29f   :  { %v3635_v11 = vpack.c.bf16 %v3634_v10, %v3634_v10  ;;  %4056 = vmatpush1.bf16.msra.mxu0 %v6031_v25  ;;  %v3774_v25 = vld [vmem:[%s7142_s6] sm:$0x3] }
 0x2a0   :  { %4057 = vmatprep.subr.bf16.mxu0 %v6036_v26  ;;  %v3823_v26 = vrot.slane %v3773_v23, %v7021_v22 }
 0x2a1   :  { %3765 = vmatmul.mubr.bf16.vlgmr.msra.gmra.mrb[36].mxu1 %v3635_v11 }
 0x2a3   :  { %4058 = vmatpush1.bf16.msra.mxu0 %v6034_v27 }
 0x2a4   :  { %4059 = vmatprep.subr.bf16.mxu0 %v6039_v29  ;;  %v3827_v29 = vrot.slane %v3773_v23, %v7027_v24 }
 0x2a7   :  { %4060 = vmatpush1.bf16.msra.mxu0 %v6037_v31 }
 0x2a8   :  { %4061 = vmatprep.subr.bf16.mxu0 %v6042_v32 }
 0x2ab   :  { %4062 = vmatpush1.bf16.msra.mxu0 %v6040_v33  ;;  %v3836_v33 = vrot.slane %v3774_v25, %v7021_v22 }
 0x2ac   :  { %4063 = vmatprep.subr.bf16.mxu0 %v6045_v34 }
 0x2af   :  { %4064 = vmatpush1.bf16.msra.mxu0 %v6043_v36  ;;  %v3840_v36 = vrot.slane %v3774_v25, %v7027_v24 }
 0x2b0   :  { %4065 = vmatprep.subr.bf16.mxu0 %v6048_v37 }
 0x2b3   :  { %4066 = vmatpush1.bf16.msra.mxu0 %v6046_v38 }
 0x2b4   :  { %4067 = vmatprep.subr.bf16.mxu0 %v6051_v39 }
 0x2b7   :  { %4068 = vmatpush1.bf16.msra.mxu0 %v6049_v40 }
 0x2b8   :  { %4069 = vmatprep.subr.bf16.mxu0 %v6054_v42 }
 0x2bb   :  { %4070 = vmatpush1.bf16.msra.mxu0 %v6052_v41 }
 0x2bc   :  { %4071 = vmatprep.subr.bf16.mxu0 %v6057_v43 }
 0x2bf   :  { %4072 = vmatpush1.bf16.msra.mxu0 %v6055_v44  ;;  %v6058_v44 = vld [vmem:[#allocation10 + $0x40] sm:$0xff]  }
 0x2c0   :  { %5617 = vmatprep.subr.bf16.mxu1 %v6058_v44 }
 0x374   :  { %v3766_v45 = vpop.f32.mrb[36].mxu1 }
 0x375   :  { %v3776_v46 = vsel %vm3775_vm1, %v3766_v45, 0.0  ;;  %v3768_v47 = vpop.f32.mrb[37].mxu1 }
 0x376   :  { %v3777_v48 = vrot.slane %v3776_v46, 4  ;;  %v3783_v49 = vsel %vm3775_vm1, %v3768_v47, 0.0  ;;  %v3770_v50 = vpop.f32.mrb[38].mxu1 }
 0x377   :  { %v3784_v51 = vrot.slane %v3783_v49, 4  ;;  %v3771_v52 = vpop.f32.mrb[39].mxu1  ;;  %v6064_v50 = vld [vmem:[#allocation10 + $0x58] sm:$0xff]  }
 0x378   :  { %v3778_v53 = vadd.f32 %v3777_v48, %v3776_v46  ;;  %v6060_v46 = vld [vmem:[#allocation10 + $0x48] sm:$0xff]   ;;  %v6062_v48 = vld [vmem:[#allocation10 + $0x50] sm:$0xff]   ;;  %v6066_v52 = vld [vmem:[#allocation10 + $0x60] sm:$0xff]  }
 0x379   :  { %v3785_v54 = vadd.f32 %v3784_v51, %v3783_v49  ;;  %v6063_v49 = vld [vmem:[#allocation10 + $0x10] sm:$0xff]   ;;  %v6065_v51 = vld [vmem:[#allocation10 + $0x18] sm:$0xff]  }
 0x37a   :  { %v3779_v55 = vrot.slane %v3778_v53, 2 }
 0x37b   :  { %v3786_v56 = vrot.slane %v3785_v54, 2 }
 0x37c   :  { %v3780_v57 = vadd.f32 %v3779_v55, %v3778_v53  ;;  %v6067_v53 = vld [vmem:[#allocation10 + $0x20] sm:$0xff]   ;;  %v6069_v55 = vld [vmem:[#allocation10 + $0x28] sm:$0xff]  }
 0x37d   :  { %v3787_v35 = vadd.f32 %v3786_v56, %v3785_v54  ;;  %v6068_v54 = vld [vmem:[#allocation10 + $0x68] sm:$0xff]   ;;  %v6070_v56 = vld [vmem:[#allocation10 + $0x70] sm:$0xff]  }
 0x37e   :  { %v3781_v58 = vrot.slane %v3780_v57, 1 }
 0x37f   :  { %v3788_v59 = vrot.slane %v3787_v35, 1 }
 0x380   :  { %v3782_v60 = vadd.f32 %v3781_v58, %v3780_v57  ;;  %v6071_v57 = vld [vmem:[#allocation10 + $0x30] sm:$0xff]   ;;  %v6073_v58 = vld [vmem:[#allocation10 + $0x38] sm:$0xff]  }
 0x381   :  { %v3789_v61 = vadd.f32 %v3788_v59, %v3787_v35  ;;  %v6072_v35 = vld [vmem:[#allocation10 + $0x78] sm:$0xff]  }
 0x382   :  { %v3791_v62 = vmul.f32 0.25, %v3782_v60 }
 0x383   :  { %v3792_v63 = vmul.f32 0.25, %v3789_v61 }
 0x384   :  { %v3793_v0 = vsub.f32 %v3766_v45, %v3791_v62  ;;  %v6059_v45 = vld [vmem:[#allocation10] sm:$0xff]  }
 0x385   :  { %v3794_v1 = vsub.f32 %v3768_v47, %v3792_v63  ;;  %5618 = vmatpush3.bf16.msra.mxu1 %v6059_v45  ;;  %v6061_v47 = vld [vmem:[#allocation10 + $0x8] sm:$0xff]  }
 0x386   :  { %v3795_v2 = vmul.f32 %v3793_v0, %v3793_v0  ;;  %5619 = vmatprep.subr.bf16.mxu1 %v6060_v46 }
 0x387   :  { %v3796_v3 = vmul.f32 %v3794_v1, %v3794_v1 }
 0x388   :  { %v3797_v4 = vsel %vm3775_vm1, %v3795_v2, 0.0 }
 0x389   :  { %v3798_v5 = vrot.slane %v3797_v4, 4  ;;  %v3804_v6 = vsel %vm3775_vm1, %v3796_v3, 0.0  ;;  %5620 = vmatpush3.bf16.msra.mxu1 %v6061_v47 }
 0x38a   :  { %v3805_v7 = vrot.slane %v3804_v6, 4  ;;  %5621 = vmatprep.subr.bf16.mxu1 %v6062_v48 }
 0x38b   :  { %v3799_v8 = vadd.f32 %v3798_v5, %v3797_v4 }
 0x38c   :  { %v3806_v9 = vadd.f32 %v3805_v7, %v3804_v6 }
 0x38d   :  { %v3800_v10 = vrot.slane %v3799_v8, 2  ;;  %5622 = vmatpush3.bf16.msra.mxu1 %v6063_v49 }
 0x38e   :  { %v3807_v11 = vrot.slane %v3806_v9, 2  ;;  %5623 = vmatprep.subr.bf16.mxu1 %v6064_v50 }
 0x38f   :  { %v3801_v12 = vadd.f32 %v3800_v10, %v3799_v8 }
 0x390   :  { %v3808_v13 = vadd.f32 %v3807_v11, %v3806_v9 }
 0x391   :  { %v3802_v14 = vrot.slane %v3801_v12, 1  ;;  %5624 = vmatpush3.bf16.msra.mxu1 %v6065_v51 }
 0x392   :  { %v3809_v15 = vrot.slane %v3808_v13, 1  ;;  %5625 = vmatprep.subr.bf16.mxu1 %v6066_v52 }
 0x393   :  { %v3803_v16 = vadd.f32 %v3802_v14, %v3801_v12 }
 0x394   :  { %v3810_v17 = vadd.f32 %v3809_v15, %v3808_v13 }
 0x395   :  { %v3811_v18 = vmul.f32 0.25, %v3803_v16  ;;  %5626 = vmatpush3.bf16.msra.mxu1 %v6067_v53 }
 0x396   :  { %v3812_v19 = vmul.f32 0.25, %v3810_v17  ;;  %5627 = vmatprep.subr.bf16.mxu1 %v6068_v54 }
 0x397   :  { %v3813_v20 = vadd.f32 1e-05, %v3811_v18 }
 0x398   :  { %v3814_v21 = vadd.f32 1e-05, %v3812_v19 }
 0x399   :  { %6114 = vrsqrt.f32 %v3813_v20  ;;  %5628 = vmatpush3.bf16.msra.mxu1 %v6069_v55 }
 0x39a   :  { %6116 = vrsqrt.f32 %v3814_v21  ;;  %5629 = vmatprep.subr.bf16.mxu1 %v6070_v56 }
 0x39d   :  { %5630 = vmatpush3.bf16.msra.mxu1 %v6071_v57 }
 0x39e   :  { %5631 = vmatprep.subr.bf16.mxu1 %v6072_v35 }
 0x3a1   :  { %5632 = vmatpush3.bf16.msra.mxu1 %v6073_v58  ;;  %v6076_v58 = vld [vmem:[%s7147_s11 + $0x4] ss:$8 sps:$4 sm:$0xff]  }
 0x3a2   :  { %4454 = vmatprep.subr.bf16.mxu1 %v6076_v58 }
 0x3a3   :  { %v6115_v27 = vpop.eup %6114 }
 0x3a4   :  { %v6117_v31 = vpop.eup %6116  ;;  %v3817_v32 = vmul.f32 %v6115_v27, %v3793_v0 }
 0x3a5   :  { %v3818_v34 = vmul.f32 %v6117_v31, %v3794_v1 }
 0x3a6   :  { %v3830_v37 = vmul.f32 %v3823_v26, %v3817_v32 }
 0x3a7   :  { %v3831_v38 = vmul.f32 %v3827_v29, %v3818_v34 }
 0x3a8   :  { %v3843_v30 = vadd.f32 %v3836_v33, %v3830_v37 }
 0x3a9   :  { %v3844_v39 = vadd.f32 %v3840_v36, %v3831_v38 }
 0x3aa   :  { %v3845_v40 = vmax.f32 %v3843_v30, 0.0 }
 0x3ab   :  { %v3846_v41 = vmax.f32 %v3844_v39, 0.0 }
 0x3ac   :  { %v3847_v43 = vpack.c.bf16 %v3845_v40, %v3845_v40 }
 0x3ad   :  { %v3848_v42 = vpack.c.bf16 %v3846_v41, %v3846_v41  ;;  %v4082_v41 = vld [vmem:[#allocation7] sm:$0x3] }
 0x3ae   :  { %v4134_v45 = vrot.slane %v4082_v41, %v7027_v24 }
 0x3af   :  { %4073 = vmatprep.mubr.bf16.mxu0 %v3848_v42  ;;  %v4083_v42 = vld [vmem:[#allocation8] sm:$0x3] }
 0x3b0   :  { %4074 = vmatmul.mubr.bf16.vlgmr.msra.gmra.mrb[40].mxu0 %v3847_v43  ;;  %v4130_v43 = vrot.slane %v4082_v41, %v7021_v22  ;;  %v4143_v48 = vrot.slane %v4083_v42, %v7021_v22  ;;  %v4147_v50 = vrot.slane %v4083_v42, %v7027_v24  ;;  %v6099_v41 = vld [vmem:[#allocation13] sm:$0xff]   ;;  %v6100_v42 = vld [vmem:[#allocation13 + $0x48] sm:$0xff]  }
 0x483   :  { %v4075_v59 = vpop.f32.mrb[40].mxu0 }
 0x484   :  { %v4084_v60 = vsel %vm3775_vm1, %v4075_v59, 0.0  ;;  %v4077_v61 = vpop.f32.mrb[41].mxu0 }
 0x485   :  { %v4085_v62 = vrot.slane %v4084_v60, 4  ;;  %v4091_v63 = vsel %vm3775_vm1, %v4077_v61, 0.0  ;;  %v4079_v0 = vpop.f32.mrb[42].mxu0 }
 0x486   :  { %v4092_v1 = vrot.slane %v4091_v63, 4  ;;  %v4080_v2 = vpop.f32.mrb[43].mxu0  ;;  %v6083_v0 = vld [vmem:[%s7147_s11 + $0x30] ss:$8 sps:$4 sm:$0xff]  }
 0x487   :  { %v4086_v3 = vadd.f32 %v4085_v62, %v4084_v60  ;;  %v6079_v60 = vld [vmem:[%s7147_s11 + $0x14] ss:$8 sps:$4 sm:$0xff]   ;;  %v6080_v62 = vld [vmem:[%s7147_s11 + $0x20] ss:$8 sps:$4 sm:$0xff]  }
 0x488   :  { %v4093_v4 = vadd.f32 %v4092_v1, %v4091_v63  ;;  %v6085_v63 = vld [vmem:[%s7147_s11 + $0x34] ss:$8 sps:$4 sm:$0xff]   ;;  %v6088_v1 = vld [vmem:[%s7147_s11 + $0x44] ss:$8 sps:$4 sm:$0xff]   ;;  %v6086_v2 = vld [vmem:[%s7147_s11 + $0x40] ss:$8 sps:$4 sm:$0xff]  }
 0x489   :  { %v4087_v5 = vrot.slane %v4086_v3, 2 }
 0x48a   :  { %v4094_v6 = vrot.slane %v4093_v4, 2 }
 0x48b   :  { %v4088_v7 = vadd.f32 %v4087_v5, %v4086_v3  ;;  %v6091_v3 = vld [vmem:[%s7147_s11 + $0x54] ss:$8 sps:$4 sm:$0xff]   ;;  %v6094_v5 = vld [vmem:[%s7147_s11 + $0x64] ss:$8 sps:$4 sm:$0xff]  }
 0x48c   :  { %v4095_v8 = vadd.f32 %v4094_v6, %v4093_v4  ;;  %v6089_v4 = vld [vmem:[%s7147_s11 + $0x50] ss:$8 sps:$4 sm:$0xff]   ;;  %v6092_v6 = vld [vmem:[%s7147_s11 + $0x60] ss:$8 sps:$4 sm:$0xff]  }
 0x48d   :  { %v4089_v9 = vrot.slane %v4088_v7, 1 }
 0x48e   :  { %v4096_v10 = vrot.slane %v4095_v8, 1 }
 0x48f   :  { %v4090_v11 = vadd.f32 %v4089_v9, %v4088_v7  ;;  %v6095_v7 = vld [vmem:[%s7147_s11 + $0x70] ss:$8 sps:$4 sm:$0xff]  }
 0x490   :  { %v4097_v12 = vadd.f32 %v4096_v10, %v4095_v8  ;;  %v6097_v8 = vld [vmem:[%s7147_s11 + $0x74] ss:$8 sps:$4 sm:$0xff]  }
 0x491   :  { %v4098_v13 = vmul.f32 0.25, %v4090_v11 }
 0x492   :  { %v4099_v14 = vmul.f32 0.25, %v4097_v12 }
 0x493   :  { %v4100_v15 = vsub.f32 %v4075_v59, %v4098_v13  ;;  %v6074_v59 = vld [vmem:[%s7147_s11] ss:$8 sps:$4 sm:$0xff]  }
 0x494   :  { %v4101_v16 = vsub.f32 %v4077_v61, %v4099_v14  ;;  %v6077_v61 = vld [vmem:[%s7147_s11 + $0x10] ss:$8 sps:$4 sm:$0xff]  }
 0x495   :  { %v4102_v17 = vmul.f32 %v4100_v15, %v4100_v15 }
 0x496   :  { %v4103_v18 = vmul.f32 %v4101_v16, %v4101_v16 }
 0x497   :  { %v4104_v19 = vsel %vm3775_vm1, %v4102_v17, 0.0 }
 0x498   :  { %v4105_v20 = vrot.slane %v4104_v19, 4  ;;  %v4111_v21 = vsel %vm3775_vm1, %v4103_v18, 0.0 }
 0x499   :  { %v4112_v23 = vrot.slane %v4111_v21, 4 }
 0x49a   :  { %v4106_v25 = vadd.f32 %v4105_v20, %v4104_v19 }
 0x49b   :  { %v4113_v26 = vadd.f32 %v4112_v23, %v4111_v21 }
 0x49c   :  { %v4107_v27 = vrot.slane %v4106_v25, 2 }
 0x49d   :  { %v4114_v29 = vrot.slane %v4113_v26, 2 }
 0x49e   :  { %v4108_v31 = vadd.f32 %v4107_v27, %v4106_v25 }
 0x49f   :  { %v4115_v32 = vadd.f32 %v4114_v29, %v4113_v26 }
 0x4a0   :  { %v4109_v33 = vrot.slane %v4108_v31, 1 }
 0x4a1   :  { %v4116_v34 = vrot.slane %v4115_v32, 1 }
 0x4a2   :  { %v4110_v36 = vadd.f32 %v4109_v33, %v4108_v31 }
 0x4a3   :  { %v4117_v37 = vadd.f32 %v4116_v34, %v4115_v32 }
 0x4a4   :  { %v4118_v38 = vmul.f32 0.25, %v4110_v36 }
 0x4a5   :  { %v4119_v30 = vmul.f32 0.25, %v4117_v37 }
 0x4a6   :  { %v4120_v39 = vadd.f32 1e-05, %v4118_v38 }
 0x4a7   :  { %v4121_v40 = vadd.f32 1e-05, %v4119_v30 }
 0x4a8   :  { %6118 = vrsqrt.f32 %v4120_v39 }
 0x4a9   :  { %6120 = vrsqrt.f32 %v4121_v40  ;;  %v6098_v40 = vld [vmem:[#allocation13 + $0x40] sm:$0xff]  }
 0x4aa   :  { %5639 = vmatprep.subr.bf16.mxu0 %v6098_v40 }
 0x4ab   :  { %5640 = vmatpush3.bf16.msra.mxu0 %v6099_v41 }
 0x4ac   :  { %5641 = vmatprep.subr.bf16.mxu0 %v6100_v42  ;;  %v4495_v42 = vld [vmem:[#allocation11] sm:$0x3] }
 0x4b2   :  { %v6119_v44 = vpop.eup %6118 }
 0x4b3   :  { %v6121_v46 = vpop.eup %6120  ;;  %v4124_v47 = vmul.f32 %v6119_v44, %v4100_v15  ;;  %v6102_v44 = vld [vmem:[#allocation13 + $0x50] sm:$0xff]  }
 0x4b4   :  { %v4125_v49 = vmul.f32 %v6121_v46, %v4101_v16  ;;  %v6104_v46 = vld [vmem:[#allocation13 + $0x58] sm:$0xff]  }
 0x4b5   :  { %v4137_v51 = vmul.f32 %v4130_v43, %v4124_v47  ;;  %v6101_v43 = vld [vmem:[#allocation13 + $0x8] sm:$0xff]   ;;  %v6105_v47 = vld [vmem:[#allocation13 + $0x18] sm:$0xff]  }
 0x4b6   :  { %v4138_v52 = vmul.f32 %v4134_v45, %v4125_v49  ;;  %5642 = vmatpush3.bf16.msra.mxu0 %v6101_v43  ;;  %v6103_v45 = vld [vmem:[#allocation13 + $0x10] sm:$0xff]   ;;  %v6107_v49 = vld [vmem:[#allocation13 + $0x20] sm:$0xff]   ;;  %v4496_v43 = vld [vmem:[%s7150_s14] sm:$0x3] }
 0x4b7   :  { %v4150_v53 = vadd.f32 %v4143_v48, %v4137_v51  ;;  %5643 = vmatprep.subr.bf16.mxu0 %v6102_v44  ;;  %v6106_v48 = vld [vmem:[#allocation13 + $0x60] sm:$0xff]   ;;  %v6109_v51 = vld [vmem:[#allocation13 + $0x28] sm:$0xff]   ;;  %v4543_v44 = vrot.slane %v4495_v42, %v7021_v22 }
 0x4b8   :  { %v4151_v54 = vadd.f32 %v4147_v50, %v4138_v52  ;;  %v6108_v50 = vld [vmem:[#allocation13 + $0x68] sm:$0xff]   ;;  %v6110_v52 = vld [vmem:[#allocation13 + $0x70] sm:$0xff]  }
 0x4b9   :  { %v4152_v55 = vmax.f32 %v4150_v53, 0.0  ;;  %v6111_v53 = vld [vmem:[#allocation13 + $0x30] sm:$0xff]  }
 0x4ba   :  { %v4153_v56 = vmax.f32 %v4151_v54, 0.0  ;;  %5644 = vmatpush3.bf16.msra.mxu0 %v6103_v45  ;;  %v6112_v54 = vld [vmem:[#allocation13 + $0x78] sm:$0xff]  }
 0x4bb   :  { %v4154_v35 = vpack.c.bf16 %v4152_v55, %v4152_v55  ;;  %5645 = vmatprep.subr.bf16.mxu0 %v6104_v46  ;;  %v6113_v55 = vld [vmem:[#allocation13 + $0x38] sm:$0xff]   ;;  %v4547_v46 = vrot.slane %v4495_v42, %v7027_v24 }
 0x4bc   :  { %v4155_v57 = vpack.c.bf16 %v4153_v56, %v4153_v56  ;;  %v4362_v56 = vld [vmem:[%s7148_s12] sm:$0x3] }
 0x4be   :  { %4316 = vmatprep.mubr.bf16.mxu1 %v4155_v57  ;;  %5646 = vmatpush3.bf16.msra.mxu0 %v6105_v47  ;;  %v4367_v57 = vrot.slane %v4362_v56, %v7021_v22 }
 0x4bf   :  { %4317 = vmatmul.mubr.bf16.vlgmr.msra.gmra.mrb[40].mxu1 %v4154_v35  ;;  %5647 = vmatprep.subr.bf16.mxu0 %v6106_v48  ;;  %v4371_v35 = vrot.slane %v4362_v56, %v7027_v24 }
 0x4c0   :  { %4486 = vmatprep.mubr.bf16.mxu1 %v6318_v28  ;;  %4455 = vmatpush1.bf16.msra.mxu1 %v6074_v59  ;;  %v6082_v28 = vld [vmem:[%s7147_s11 + $0x24] ss:$8 sps:$4 sm:$0xff]  }
 0x4c1   :  { %4456 = vmatprep.subr.bf16.mxu1 %v6079_v60 }
 0x4c2   :  { %5648 = vmatpush3.bf16.msra.mxu0 %v6107_v49  ;;  %v4556_v49 = vrot.slane %v4496_v43, %v7021_v22 }
 0x4c3   :  { %5649 = vmatprep.subr.bf16.mxu0 %v6108_v50 }
 0x4c4   :  { %4457 = vmatpush1.bf16.msra.mxu1 %v6077_v61 }
 0x4c5   :  { %4458 = vmatprep.subr.bf16.mxu1 %v6082_v28 }
 0x4c6   :  { %5650 = vmatpush3.bf16.msra.mxu0 %v6109_v51  ;;  %v4560_v51 = vrot.slane %v4496_v43, %v7027_v24 }
 0x4c7   :  { %5651 = vmatprep.subr.bf16.mxu0 %v6110_v52 }
 0x4c8   :  { %4459 = vmatpush1.bf16.msra.mxu1 %v6080_v62 }
 0x4c9   :  { %4460 = vmatprep.subr.bf16.mxu1 %v6085_v63 }
 0x4ca   :  { %5652 = vmatpush3.bf16.msra.mxu0 %v6111_v53 }
 0x4cb   :  { %5653 = vmatprep.subr.bf16.mxu0 %v6112_v54 }
 0x4cc   :  { %4461 = vmatpush1.bf16.msra.mxu1 %v6083_v0 }
 0x4cd   :  { %4462 = vmatprep.subr.bf16.mxu1 %v6088_v1 }
 0x4ce   :  { %5654 = vmatpush3.bf16.msra.mxu0 %v6113_v55 }
 0x4d0   :  { %4463 = vmatpush1.bf16.msra.mxu1 %v6086_v2 }
 0x4d1   :  { %4464 = vmatprep.subr.bf16.mxu1 %v6091_v3 }
 0x4d4   :  { %4465 = vmatpush1.bf16.msra.mxu1 %v6089_v4 }
 0x4d5   :  { %4466 = vmatprep.subr.bf16.mxu1 %v6094_v5 }
 0x4d8   :  { %4467 = vmatpush1.bf16.msra.mxu1 %v6092_v6 }
 0x4d9   :  { %4468 = vmatprep.subr.bf16.mxu1 %v6097_v8 }
 0x4dc   :  { %4469 = vmatpush1.bf16.msra.mxu1 %v6095_v7 }
 0x592   :  { %v5633_v9 = vpop.f32.mrb[40].mxu1 }
 0x593   :  { %v5634_v10 = vpop.f32.mrb[41].mxu1 }
 0x594   :  { %v5635_v11 = vadd.f32 %v5634_v10, %v5633_v9  ;;  %v5636_v12 = vpop.f32.mrb[42].mxu1 }
 0x595   :  { %v5637_v13 = vpop.f32.mrb[43].mxu1 }
 0x596   :  { %v4324_v14 = vsel %vm3775_vm1, %v5635_v11, 0.0 }
 0x597   :  { %v4325_v15 = vrot.slane %v4324_v14, 4 }
 0x599   :  { %v4326_v16 = vadd.f32 %v4325_v15, %v4324_v14 }
 0x59b   :  { %v4327_v17 = vrot.slane %v4326_v16, 2 }
 0x59d   :  { %v4328_v18 = vadd.f32 %v4327_v17, %v4326_v16 }
 0x59f   :  { %v4329_v19 = vrot.slane %v4328_v18, 1 }
 0x5a1   :  { %v4330_v20 = vadd.f32 %v4329_v19, %v4328_v18 }
 0x5a3   :  { %v4331_v21 = vmul.f32 0.25, %v4330_v20 }
 0x5a5   :  { %v4332_v23 = vsub.f32 %v5635_v11, %v4331_v21 }
 0x5a7   :  { %v4333_v25 = vmul.f32 %v4332_v23, %v4332_v23 }
 0x5a9   :  { %v4334_v26 = vsel %vm3775_vm1, %v4333_v25, 0.0 }
 0x5aa   :  { %v4335_v27 = vrot.slane %v4334_v26, 4 }
 0x5ac   :  { %v4336_v29 = vadd.f32 %v4335_v27, %v4334_v26 }
 0x5ae   :  { %v4337_v31 = vrot.slane %v4336_v29, 2 }
 0x5b0   :  { %v4338_v32 = vadd.f32 %v4337_v31, %v4336_v29 }
 0x5b2   :  { %v4339_v33 = vrot.slane %v4338_v32, 1 }
 0x5b4   :  { %v4340_v34 = vadd.f32 %v4339_v33, %v4338_v32 }
 0x5b6   :  { %v4341_v36 = vmul.f32 0.25, %v4340_v34 }
 0x5b8   :  { %v4342_v37 = vadd.f32 1e-05, %v4341_v36 }
 0x5ba   :  { %6122 = vrsqrt.f32 %v4342_v37 }
 0x5c4   :  { %v6123_v38 = vpop.eup %6122 }
 0x5c5   :  { %v7095_v30 = vmul.f32 %v6123_v38, %v4332_v23 }
 0x5c7   :  { %v4345_v39 = vpack.c.bf16 %v7095_v30, %v7095_v30 }
 0x5c9   :  { %4487 = vmatmul.mubr.bf16.vlgmr.msra.gmra.mrb[44].mxu1 %v4345_v39 }
 0x69c   :  { %v4488_v58 = vpop.f32.mrb[44].mxu1 }
 0x69d   :  { %v4489_v59 = vadd.f32 %v4488_v58, %v4367_v57  ;;  %v4490_v60 = vpop.f32.mrb[45].mxu1 }
 0x69e   :  { %v4491_v61 = vadd.f32 %v4490_v60, %v4371_v35  ;;  %v4492_v28 = vpop.f32.mrb[46].mxu1  ;;  %v5182_v60 = vld [vmem:[%s7152_s16] ss:$0 sm:$0xff] }
 0x69f   :  { %v4497_v62 = vsel %vm3775_vm1, %v4489_v59, 0.0  ;;  %v4493_v63 = vpop.f32.mrb[47].mxu1 }
 0x6a0   :  { %v4498_v0 = vrot.slane %v4497_v62, 4  ;;  %v4504_v1 = vsel %vm3775_vm1, %v4491_v61, 0.0 }
 0x6a1   :  { %v4505_v2 = vrot.slane %v4504_v1, 4 }
 0x6a2   :  { %v4499_v3 = vadd.f32 %v4498_v0, %v4497_v62 }
 0x6a3   :  { %v4506_v4 = vadd.f32 %v4505_v2, %v4504_v1  ;;  %v4751_v1 = vmul.f32 %v7095_v30, %v7095_v30 }
 0x6a4   :  { %v4500_v5 = vrot.slane %v4499_v3, 2 }
 0x6a5   :  { %v4507_v6 = vrot.slane %v4506_v4, 2  ;;  %v4752_v2 = vsel %vm3775_vm1, %v4751_v1, 0.0 }
 0x6a6   :  { %v4501_v7 = vadd.f32 %v4500_v5, %v4499_v3 }
 0x6a7   :  { %v4508_v8 = vadd.f32 %v4507_v6, %v4506_v4 }
 0x6a8   :  { %v4502_v9 = vrot.slane %v4501_v7, 1 }
 0x6a9   :  { %v4509_v10 = vrot.slane %v4508_v8, 1 }
 0x6aa   :  { %v4503_v11 = vadd.f32 %v4502_v9, %v4501_v7 }
 0x6ab   :  { %v4510_v12 = vadd.f32 %v4509_v10, %v4508_v8 }
 0x6ac   :  { %v4511_v13 = vmul.f32 0.25, %v4503_v11 }
 0x6ad   :  { %v4512_v14 = vmul.f32 0.25, %v4510_v12 }
 0x6ae   :  { %v4513_v15 = vsub.f32 %v4489_v59, %v4511_v13 }
 0x6af   :  { %v4514_v16 = vsub.f32 %v4491_v61, %v4512_v14 }
 0x6b0   :  { %v4515_v17 = vmul.f32 %v4513_v15, %v4513_v15 }
 0x6b1   :  { %v4516_v18 = vmul.f32 %v4514_v16, %v4514_v16 }
 0x6b2   :  { %v4517_v19 = vsel %vm3775_vm1, %v4515_v17, 0.0 }
 0x6b3   :  { %v4518_v20 = vrot.slane %v4517_v19, 4  ;;  %v4524_v21 = vsel %vm3775_vm1, %v4516_v18, 0.0 }
 0x6b4   :  { %v4525_v23 = vrot.slane %v4524_v21, 4 }
 0x6b5   :  { %v4519_v25 = vadd.f32 %v4518_v20, %v4517_v19 }
 0x6b6   :  { %v4526_v26 = vadd.f32 %v4525_v23, %v4524_v21 }
 0x6b7   :  { %v4520_v27 = vrot.slane %v4519_v25, 2 }
 0x6b8   :  { %v4527_v29 = vrot.slane %v4526_v26, 2 }
 0x6b9   :  { %v4521_v31 = vadd.f32 %v4520_v27, %v4519_v25 }
 0x6ba   :  { %v4528_v32 = vadd.f32 %v4527_v29, %v4526_v26 }
 0x6bb   :  { %v4522_v33 = vrot.slane %v4521_v31, 1 }
 0x6bc   :  { %v4529_v34 = vrot.slane %v4528_v32, 1 }
 0x6bd   :  { %v4523_v36 = vadd.f32 %v4522_v33, %v4521_v31 }
 0x6be   :  { %v4530_v37 = vadd.f32 %v4529_v34, %v4528_v32 }
 0x6bf   :  { %v4531_v38 = vmul.f32 0.25, %v4523_v36 }
 0x6c0   :  { %v4532_v39 = vmul.f32 0.25, %v4530_v37 }
 0x6c1   :  { %v4533_v40 = vadd.f32 1e-05, %v4531_v38 }
 0x6c2   :  { %v4534_v41 = vadd.f32 1e-05, %v4532_v39 }
 0x6c3   :  { %6124 = vrsqrt.f32 %v4533_v40 }
 0x6c4   :  { %6126 = vrsqrt.f32 %v4534_v41 }
 0x6cd   :  { %v6125_v45 = vpop.eup %6124 }
 0x6ce   :  { %v6127_v47 = vpop.eup %6126  ;;  %v4537_v48 = vmul.f32 %v6125_v45, %v4513_v15 }
 0x6cf   :  { %v4538_v50 = vmul.f32 %v6127_v47, %v4514_v16 }
 0x6d0   :  { %v4550_v52 = vmul.f32 %v4543_v44, %v4537_v48 }
 0x6d1   :  { %v4551_v53 = vmul.f32 %v4547_v46, %v4538_v50 }
 0x6d2   :  { %v4563_v54 = vadd.f32 %v4556_v49, %v4550_v52 }
 0x6d3   :  { %v4564_v55 = vadd.f32 %v4560_v51, %v4551_v53 }
 0x6d4   :  { %v4565_v56 = vmax.f32 %v4563_v54, 0.0 }
 0x6d5   :  { %v4566_v57 = vmax.f32 %v4564_v55, 0.0 }
 0x6d6   :  { %v4567_v58 = vpack.c.bf16 %v4565_v56, %v4565_v56 }
 0x6d7   :  { %v4568_v35 = vpack.c.bf16 %v4566_v57, %v4566_v57 }
 0x6d9   :  { %4736 = vmatprep.mubr.bf16.mxu0 %v4568_v35 }
 0x6da   :  { %4737 = vmatmul.mubr.bf16.vlgmr.msra.gmra.mrb[44].mxu0 %v4567_v58 }
 0x7ad   :  { %v5655_v59 = vpop.f32.mrb[44].mxu0 }
 0x7ae   :  { %v5656_v61 = vpop.f32.mrb[45].mxu0 }
 0x7af   :  { %v5657_v22 = vadd.f32 %v5656_v61, %v5655_v59  ;;  %v5658_v28 = vpop.f32.mrb[46].mxu0 }
 0x7b0   :  { %v5659_v62 = vpop.f32.mrb[47].mxu0 }
 0x7b1   :  { %v4739_v24 = vadd.f32 %v5657_v22, %v5182_v60 }
 0x7b3   :  { %v4744_v63 = vmul.f32 %v4739_v24, %v4739_v24 }
 0x7b5   :  { %v4745_v0 = vsel %vm3775_vm1, %v4744_v63, 0.0 }
 0x7b6   :  { %4746 = vadd.xlane.f32.xlu0 %v4745_v0 }
 0x7ba   :  { %4753 = vadd.xlane.f32.xlu0 %v4752_v2 }
 0x843   :  { %v4747_v3 = vpop.xlane.xlu0 %4746 }
 0x844   :  { %v4748_v4 = vmax.f32 %v4747_v3, 1e-24 }
 0x846   :  { %6128 = vrsqrt.f32 %v4748_v4 }
 0x847   :  { %v4754_v5 = vpop.xlane.xlu0 %4753 }
 0x848   :  { %v4755_v6 = vmax.f32 %v4754_v5, 1e-24 }
 0x84a   :  { %6130 = vrsqrt.f32 %v4755_v6 }
 0x850   :  { %v6129_v7 = vpop.eup %6128 }
 0x851   :  { %v4750_v9 = vmul.f32 %v6129_v7, %v4739_v24 }
 0x854   :  { %v6131_v8 = vpop.eup %6130 }
 0x855   :  { %v4757_v10 = vmul.f32 %v6131_v8, %v7095_v30 }
 0x857   :  { %v4758_v11 = vmul.f32 %v4757_v10, %v4750_v9 }
 0x859   :  { %v4759_v12 = vsel %vm3775_vm1, %v4758_v11, 0.0 }
 0x85a   :  { %4760 = vadd.xlane.f32.xlu1 %v4759_v12 }
 0x8e7   :  { %v4761_v13 = vpop.xlane.xlu1 %4760 }
 0x8e8   :  { %v4762_v14 = vmul.f32 2.0, %v4761_v13 }
 0x8ea   :  { %v4763_v15 = vsub.f32 2.0, %v4762_v14 }
 0x8ec   :  { %v4765_v16 = vsel %vm4764_vm2, %v4763_v15, 0.0 }
 0x8ed   :  { %4766 = vadd.xlane.f32.xlu1 %v4765_v16 }
 0x97a   :  { %v4767_v17 = vpop.xlane.xlu1 %4766 }
 0x97b   :  { %v4768_v18 = vrot.slane %v4767_v17, 4 }
 0x97d   :  { %v4769_v19 = vadd.f32 %v4768_v18, %v4767_v17 }
 0x97f   :  { %v4770_v20 = vrot.slane %v4769_v19, 2 }
 0x981   :  { %v4771_v21 = vadd.f32 %v4770_v20, %v4769_v19 }
 0x983   :  { %v4772_v23 = vrot.slane %v4771_v21, 1 }
 0x985   :  { %v4773_v25 = vadd.f32 %v4772_v23, %v4771_v21 }
 0x987   :  { %5661 = vpush %v4773_v25 }
 0x9b8   :  { %s5662_s16 = spop %5661 }
 0x9b9   :  { %s4777_s18 = smul.f32 0.25, %s5662_s16 }
 0x9bb   :  { %s4778_s19 = smul.f32 2.0, %s4777_s18 }
 0x9bd   :  { %4780 = sst [smem:[#allocation14]] %s4778_s19 }
 0x9be   :  { %6295 = shalt.err (!%p6292_p2)
}
 0x9bf   :  { %s6319_s10 = smov [#allocation14]  }
 0x9c0   :  { %4788 = dma.smem_to_hbm %s6319_s10, 16, %s7162_s1, [#allocation4]  }
 0x9c1   :  { %6304 = dma.done.wait [#allocation4], 16  }
 0x9c2   :  { %6305 = vsyncadd [#allocation4], 4294967280 }
 0x9c3   :  { %4792 = sfence }
 0x9c4   :  { %4793 = vsyncpa [#allocation3], 1 }
 0x9c5   :  { %4794 = vsyncpa [#allocation6], 1 }
 0x9c6   :  { %4795 = vsyncpa [#allocation9], 1 }
 0x9c7   :  { %4796 = vsyncpa [#allocation12], 1 }
 0x9c8   :  { %4797 = vsyncpa [#allocation4], 1 }

</bundles_post_ra>
